<compile_context>
chip_gen: v7x
topology: tpu7x:2x2x1
jax: 0.10.0
libtpu: 0.0.40
codegen_flags: <defaults>
</compile_context>

<pallas_src>
import functools
import math

import jax
import jax.numpy as jnp
from jax.experimental import pallas as pl
from jax.experimental.pallas import tpu as pltpu

D_MODEL = 32
N_HEAD = 1           # single head => head_dim == d_model
MAXLEN = 5
N_LAYER = 2
EPS = 1e-5           # PyTorch LayerNorm default
NEG_INF = -1e30
MAX_BLOCK_B = 64     # sequences per grid step (M = MAX_BLOCK_B * S_pad rows)


def _layernorm(x, g, b):
    mu = jnp.mean(x, axis=-1, keepdims=True)
    var = jnp.mean((x - mu) ** 2, axis=-1, keepdims=True)   # biased, like torch
    return (x - mu) * jax.lax.rsqrt(var + EPS) * g + b


def sasrec_kernel(item_ref, cand_ref, user_ref, pos_ref, w_ref, v_ref, out_ref,
                  *, s_real):
    """One block of TB sequences, everything resident in VMEM.

    item_ref : (TB, S_pad, D) f32   item embeddings (zero-padded rows)
    cand_ref : (TB, S_pad, D) f32   candidate item embeddings
    user_ref : (TB, D)        f32   user embeddings
    pos_ref  : (S_pad, D)     f32   positional embeddings (zero-padded rows)
    w_ref    : (L*2D + 2D, 3D) bf16 packed matmul weights (pre-transposed)
    v_ref    : (L*10 + 3, D)  f32   packed bias / LayerNorm / head vectors
    out_ref  : (TB, S_pad)    f32   sigmoid(logits)
    """
    TB, S_pad, D = item_ref.shape
    M = TB * S_pad
    scale = 1.0 / math.sqrt(D // N_HEAD)

    # Pad-column attention bias generated in-kernel (no HBM traffic).
    col = jax.lax.broadcasted_iota(jnp.int32, (1, 1, S_pad), 2)
    pad_bias = jnp.where(col < s_real, 0.0, NEG_INF).astype(jnp.float32)

    x = (item_ref[...] + pos_ref[...][None, :, :]).reshape(M, D)   # (M, D) f32

    for l in range(N_LAYER):                                       # static, tiny
        wb = l * 2 * D
        vb = l * 10
        w_qkv = w_ref[wb:wb + D, :]                                # (D, 3D) bf16
        w_o = w_ref[wb + D:wb + 2 * D, 0:D]                        # (D, D)
        w_ff1 = w_ref[wb + D:wb + 2 * D, D:2 * D]
        w_ff2 = w_ref[wb + D:wb + 2 * D, 2 * D:3 * D]
        b_q = v_ref[vb + 0:vb + 1, :]
        b_k = v_ref[vb + 1:vb + 2, :]
        b_v = v_ref[vb + 2:vb + 3, :]
        b_o = v_ref[vb + 3:vb + 4, :]
        b_f1 = v_ref[vb + 4:vb + 5, :]
        b_f2 = v_ref[vb + 5:vb + 6, :]
        g1, be1 = v_ref[vb + 6:vb + 7, :], v_ref[vb + 7:vb + 8, :]
        g2, be2 = v_ref[vb + 8:vb + 9, :], v_ref[vb + 9:vb + 10, :]

        # ---- self-attention (post-norm encoder layer, dropout = 0) ----
        qkv = jnp.dot(x.astype(jnp.bfloat16), w_qkv,
                      preferred_element_type=jnp.float32)          # (M, 3D)
        q = (qkv[:, :D] + b_q).reshape(TB, S_pad, D)
        k = (qkv[:, D:2 * D] + b_k).reshape(TB, S_pad, D)
        v = (qkv[:, 2 * D:] + b_v).reshape(TB, S_pad, D)

        s = jnp.einsum('bqd,bkd->bqk',
                       q.astype(jnp.bfloat16), k.astype(jnp.bfloat16),
                       preferred_element_type=jnp.float32)         # (TB,S,S) f32
        s = s * scale + pad_bias
        s = s - jnp.max(s, axis=-1, keepdims=True)
        p = jnp.exp(s)
        p = p * pl.reciprocal(jnp.sum(p, axis=-1, keepdims=True), approx=True)

        a = jnp.einsum('bqk,bkd->bqd',
                       p.astype(jnp.bfloat16), v.astype(jnp.bfloat16),
                       preferred_element_type=jnp.float32)         # (TB,S,D)
        a = jnp.dot(a.reshape(M, D).astype(jnp.bfloat16), w_o,
                    preferred_element_type=jnp.float32) + b_o
        x = _layernorm(x + a, g1, be1)

        # ---- feed-forward (relu, dim_feedforward == d_model) ----
        h = jnp.dot(x.astype(jnp.bfloat16), w_ff1,
                    preferred_element_type=jnp.float32) + b_f1
        h = jnp.maximum(h, 0.0)
        h = jnp.dot(h.astype(jnp.bfloat16), w_ff2,
                    preferred_element_type=jnp.float32) + b_f2
        x = _layernorm(x + h, g2, be2)

    # ---- head: concat(x, user) @ W1 -> * cand -> Linear(D,1) -> sigmoid ----
    hb = N_LAYER * 2 * D
    vh = N_LAYER * 10
    w_head = w_ref[hb:hb + 2 * D, 0:D]                             # (2D, D) bf16
    b_h1 = v_ref[vh + 0:vh + 1, :]                                 # (1, D)
    w_out = v_ref[vh + 1:vh + 2, :].reshape(1, 1, D)               # (1, 1, D)
    b_out = v_ref[vh + 2:vh + 3, 0:1]                              # (1, 1)

    user_b = jnp.broadcast_to(user_ref[...][:, None, :], (TB, S_pad, D))
    xu = jnp.concatenate([x.reshape(TB, S_pad, D), user_b], axis=-1)  # (TB,S,2D)
    aff = jnp.dot(xu.reshape(M, 2 * D).astype(jnp.bfloat16), w_head,
                  preferred_element_type=jnp.float32) + b_h1       # (M, D)
    h = aff.reshape(TB, S_pad, D) * cand_ref[...]
    # Linear(D -> 1) as VPU multiply + lane reduction (no N=1 MXU matmul).
    logit = jnp.sum(h * w_out, axis=-1) + b_out                    # (TB, S_pad)
    out_ref[...] = jax.nn.sigmoid(logit)


def init_params(key, num_user, num_item):
    """Deterministic synthetic parameters matching the module's shapes."""
    D = D_MODEL
    n_keys = 3 + N_LAYER * 8 + 4
    keys = iter(jax.random.split(key, n_keys))

    def rnd(shape, k):
        return (0.02 * jax.random.normal(k, shape)).astype(jnp.float32)

    p = {
        "user_emb": rnd((num_user, D), next(keys)),
        "item_emb": rnd((num_item, D), next(keys)),
        "pos_emb": rnd((MAXLEN, D), next(keys)),
        "layers": [],
    }
    for _ in range(N_LAYER):
        layer = {
            "in_proj_w": rnd((3 * D, D), next(keys)),
            "in_proj_b": rnd((3 * D,), next(keys)),
            "out_proj_w": rnd((D, D), next(keys)),
            "out_proj_b": rnd((D,), next(keys)),
            "lin1_w": rnd((D, D), next(keys)),        # dim_feedforward == d_model
            "lin1_b": rnd((D,), next(keys)),
            "lin2_w": rnd((D, D), next(keys)),
            "lin2_b": rnd((D,), next(keys)),
            "ln1_g": jnp.ones((D,), jnp.float32),
            "ln1_b": jnp.zeros((D,), jnp.float32),
            "ln2_g": jnp.ones((D,), jnp.float32),
            "ln2_b": jnp.zeros((D,), jnp.float32),
        }
        p["layers"].append(layer)
    p["aff1_w"] = rnd((D, 2 * D), next(keys))          # Linear(64 -> 32), (out, in)
    p["aff1_b"] = rnd((D,), next(keys))
    p["aff2_w"] = rnd((1, D), next(keys))              # Linear(32 -> 1)
    p["aff2_b"] = rnd((1,), next(keys))
    return p


def _pack_params(p):
    """Pack all parameters into 2 blobs: bf16 matmul weights + f32 vectors."""
    D = D_MODEL
    w_rows, v_rows = [], []
    for layer in p["layers"]:
        w_rows.append(layer["in_proj_w"].T)                         # (D, 3D)
        w_rows.append(jnp.concatenate([layer["out_proj_w"].T,
                                       layer["lin1_w"].T,
                                       layer["lin2_w"].T], axis=1))  # (D, 3D)
        b = layer["in_proj_b"]
        v_rows.extend([b[:D], b[D:2 * D], b[2 * D:],
                       layer["out_proj_b"], layer["lin1_b"], layer["lin2_b"],
                       layer["ln1_g"], layer["ln1_b"],
                       layer["ln2_g"], layer["ln2_b"]])
    # Head Linear(2D -> D): rows 0..D-1 multiply x, rows D..2D-1 multiply user
    # (matching torch.concat((output, user), dim=-1)); pad cols to 3D.
    head_w = jnp.concatenate(
        [p["aff1_w"].T, jnp.zeros((2 * D, 2 * D), jnp.float32)], axis=1)
    w_rows.append(head_w)                                           # (2D, 3D)
    v_rows.extend([p["aff1_b"], p["aff2_w"][0],
                   jnp.broadcast_to(p["aff2_b"], (D,))])
    w_blob = jnp.concatenate(w_rows, axis=0).astype(jnp.bfloat16)   # (L*2D+2D, 3D)
    v_blob = jnp.stack(v_rows).astype(jnp.float32)                  # (L*10+3, D)
    return w_blob, v_blob


def sasrec_forward(params, uid, item_ids, cand_item_ids):
    # glue: embedding gathers in plain JAX
    user_emb = params["user_emb"][uid]                    # (B, D)
    item_emb = params["item_emb"][item_ids]               # (B, S, D)
    cand_emb = params["item_emb"][cand_item_ids]          # (B, S, D)
    B, S, D = item_emb.shape
    pos = params["pos_emb"][:S]                           # (S, D)

    # Pad sequence axis to a sublane multiple, batch axis to a block multiple.
    S_pad = max(8, -(-S // 8) * 8)
    block_b = B if B <= MAX_BLOCK_B else MAX_BLOCK_B
    B_pad = -(-B // block_b) * block_b

    item_p = jnp.zeros((B_pad, S_pad, D), jnp.float32).at[:B, :S].set(item_emb)
    cand_p = jnp.zeros((B_pad, S_pad, D), jnp.float32).at[:B, :S].set(cand_emb)
    user_p = jnp.zeros((B_pad, D), jnp.float32).at[:B].set(user_emb)
    pos_p = jnp.zeros((S_pad, D), jnp.float32).at[:S].set(pos)

    w_blob, v_blob = _pack_params(params)
    kernel = functools.partial(sasrec_kernel, s_real=S)

    out = pl.pallas_call(
        kernel,
        out_shape=jax.ShapeDtypeStruct((B_pad, S_pad), jnp.float32),
        grid=(B_pad // block_b,),
        in_specs=[
            pl.BlockSpec((block_b, S_pad, D), lambda i: (i, 0, 0)),   # item
            pl.BlockSpec((block_b, S_pad, D), lambda i: (i, 0, 0)),   # cand
            pl.BlockSpec((block_b, D), lambda i: (i, 0)),             # user
            pl.BlockSpec((S_pad, D), lambda i: (0, 0)),               # pos
            pl.BlockSpec(w_blob.shape, lambda i: (0, 0)),             # weights
            pl.BlockSpec(v_blob.shape, lambda i: (0, 0)),             # vectors
        ],
        out_specs=pl.BlockSpec((block_b, S_pad), lambda i: (i, 0)),
        compiler_params=pltpu.CompilerParams(
            dimension_semantics=("parallel",),
            vmem_limit_bytes=32 * 1024 * 1024),
    )(item_p, cand_p, user_p, pos_p, w_blob, v_blob)
    return out[:B, :S]                                    # like .squeeze(-1)


if __name__ == "__main__":
    key = jax.random.PRNGKey(0)
    k_param, k_uid, k_item, k_cand = jax.random.split(key, 4)

    num_user, num_item = 11, 23
    B, S = 2, MAXLEN                                      # maxlen = 5

    params = init_params(k_param, num_user, num_item)
    uid = jax.random.randint(k_uid, (B,), 0, num_user)
    item_ids = jax.random.randint(k_item, (B, S), 0, num_item)
    cand_item_ids = jax.random.randint(k_cand, (B, S), 0, num_item)

    forward = jax.jit(sasrec_forward)
    out = forward(params, uid, item_ids, cand_item_ids)
    out = jax.block_until_ready(out)
    assert out.shape == (B, S)
    assert bool(jnp.all(jnp.isfinite(out)))
    print("KERNEL_OK")
</pallas_src>

<mosaic_0001>
module attributes {stable_mosaic.version = 11 : i64} {
  func.func @sasrec_kernel(%arg0: i32, %arg1: memref<2x8x32xf32, #tpu.memory_space<vmem>>, %arg2: memref<2x8x32xf32, #tpu.memory_space<vmem>>, %arg3: memref<2x32xf32, #tpu.memory_space<vmem>>, %arg4: memref<8x32xf32, #tpu.memory_space<vmem>>, %arg5: memref<192x96xbf16, #tpu.memory_space<vmem>>, %arg6: memref<23x32xf32, #tpu.memory_space<vmem>>, %arg7: memref<2x8xf32, #tpu.memory_space<vmem>>) attributes {dimension_semantics = [#tpu.dimension_semantics<parallel>], iteration_bounds = array<i64: 1>, scalar_prefetch = 0 : i64, scratch_operands = 0 : i64, tpu.core_type = #tpu.core_type<tc>, window_params = [{transform_indices = @transform_0, window_bounds = array<i64: 2, 8, 32>}, {transform_indices = @transform_1, window_bounds = array<i64: 2, 8, 32>}, {transform_indices = @transform_2, window_bounds = array<i64: 2, 32>}, {pipeline_mode = #tpu.pipeline_mode<synchronous>, transform_indices = @transform_3, window_bounds = array<i64: 8, 32>}, {pipeline_mode = #tpu.pipeline_mode<synchronous>, transform_indices = @transform_4, window_bounds = array<i64: 192, 96>}, {pipeline_mode = #tpu.pipeline_mode<synchronous>, transform_indices = @transform_5, window_bounds = array<i64: 23, 32>}, {transform_indices = @transform_6, window_bounds = array<i64: 2, 8>}]} {
    %0 = tpu.iota {dimensions = array<i32: 2>} : vector<1x1x8xi32>
    %c5_i32 = arith.constant 5 : i32
    %1 = vector.broadcast %c5_i32 : i32 to vector<1x1x8xi32>
    %2 = arith.cmpi slt, %0, %1 : vector<1x1x8xi32>
    %cst = arith.constant 0.000000e+00 : f32
    %cst_0 = arith.constant -1.000000e+30 : f32
    %3 = vector.broadcast %cst : f32 to vector<1x1x8xf32>
    %4 = vector.broadcast %cst_0 : f32 to vector<1x1x8xf32>
    %5 = arith.select %2, %3, %4 : vector<1x1x8xi1>, vector<1x1x8xf32>
    %c0 = arith.constant 0 : index
    %c0_1 = arith.constant 0 : index
    %c0_2 = arith.constant 0 : index
    %6 = vector.load %arg1[%c0, %c0_1, %c0_2] : memref<2x8x32xf32, #tpu.memory_space<vmem>>, vector<2x8x32xf32>
    %c0_3 = arith.constant 0 : index
    %c0_4 = arith.constant 0 : index
    %7 = vector.load %arg4[%c0_3, %c0_4] : memref<8x32xf32, #tpu.memory_space<vmem>>, vector<8x32xf32>
    %8 = vector.shape_cast %7 : vector<8x32xf32> to vector<1x8x32xf32>
    %9 = vector.broadcast %8 : vector<1x8x32xf32> to vector<2x8x32xf32>
    %10 = arith.addf %6, %9 : vector<2x8x32xf32>
    %11 = vector.shape_cast %10 : vector<2x8x32xf32> to vector<16x32xf32>
    %c0_5 = arith.constant 0 : index
    %c0_6 = arith.constant 0 : index
    %12 = vector.load %arg5[%c0_5, %c0_6] : memref<192x96xbf16, #tpu.memory_space<vmem>>, vector<32x96xbf16>
    %c32 = arith.constant 32 : index
    %c0_7 = arith.constant 0 : index
    %13 = vector.load %arg5[%c32, %c0_7] : memref<192x96xbf16, #tpu.memory_space<vmem>>, vector<32x32xbf16>
    %c32_8 = arith.constant 32 : index
    %c32_9 = arith.constant 32 : index
    %14 = vector.load %arg5[%c32_8, %c32_9] : memref<192x96xbf16, #tpu.memory_space<vmem>>, vector<32x32xbf16>
    %c32_10 = arith.constant 32 : index
    %c64 = arith.constant 64 : index
    %15 = vector.load %arg5[%c32_10, %c64] : memref<192x96xbf16, #tpu.memory_space<vmem>>, vector<32x32xbf16>
    %c0_11 = arith.constant 0 : index
    %c0_12 = arith.constant 0 : index
    %16 = vector.load %arg6[%c0_11, %c0_12] : memref<23x32xf32, #tpu.memory_space<vmem>>, vector<1x32xf32>
    %c1 = arith.constant 1 : index
    %c0_13 = arith.constant 0 : index
    %17 = vector.load %arg6[%c1, %c0_13] : memref<23x32xf32, #tpu.memory_space<vmem>>, vector<1x32xf32>
    %c2 = arith.constant 2 : index
    %c0_14 = arith.constant 0 : index
    %18 = vector.load %arg6[%c2, %c0_14] : memref<23x32xf32, #tpu.memory_space<vmem>>, vector<1x32xf32>
    %c3 = arith.constant 3 : index
    %c0_15 = arith.constant 0 : index
    %19 = vector.load %arg6[%c3, %c0_15] : memref<23x32xf32, #tpu.memory_space<vmem>>, vector<1x32xf32>
    %c4 = arith.constant 4 : index
    %c0_16 = arith.constant 0 : index
    %20 = vector.load %arg6[%c4, %c0_16] : memref<23x32xf32, #tpu.memory_space<vmem>>, vector<1x32xf32>
    %c5 = arith.constant 5 : index
    %c0_17 = arith.constant 0 : index
    %21 = vector.load %arg6[%c5, %c0_17] : memref<23x32xf32, #tpu.memory_space<vmem>>, vector<1x32xf32>
    %c6 = arith.constant 6 : index
    %c0_18 = arith.constant 0 : index
    %22 = vector.load %arg6[%c6, %c0_18] : memref<23x32xf32, #tpu.memory_space<vmem>>, vector<1x32xf32>
    %c7 = arith.constant 7 : index
    %c0_19 = arith.constant 0 : index
    %23 = vector.load %arg6[%c7, %c0_19] : memref<23x32xf32, #tpu.memory_space<vmem>>, vector<1x32xf32>
    %c8 = arith.constant 8 : index
    %c0_20 = arith.constant 0 : index
    %24 = vector.load %arg6[%c8, %c0_20] : memref<23x32xf32, #tpu.memory_space<vmem>>, vector<1x32xf32>
    %c9 = arith.constant 9 : index
    %c0_21 = arith.constant 0 : index
    %25 = vector.load %arg6[%c9, %c0_21] : memref<23x32xf32, #tpu.memory_space<vmem>>, vector<1x32xf32>
    %26 = arith.truncf %11 : vector<16x32xf32> to vector<16x32xbf16>
    %cst_22 = arith.constant dense<0.000000e+00> : vector<16x96xf32>
    %27 = tpu.matmul %26, %12, %cst_22 {dimension_numbers = #tpu.dot_dimension_numbers<[1], [0], [0], [1], [0, 0, 1, 1], [], []>} : vector<16x32xbf16>, vector<32x96xbf16>, vector<16x96xf32> -> vector<16x96xf32>
    %28 = vector.extract_strided_slice %27 {offsets = [0, 0], sizes = [16, 32], strides = [1, 1]} : vector<16x96xf32> to vector<16x32xf32>
    %29 = vector.broadcast %16 : vector<1x32xf32> to vector<16x32xf32>
    %30 = arith.addf %28, %29 : vector<16x32xf32>
    %31 = vector.shape_cast %30 : vector<16x32xf32> to vector<2x8x32xf32>
    %32 = vector.extract_strided_slice %27 {offsets = [0, 32], sizes = [16, 32], strides = [1, 1]} : vector<16x96xf32> to vector<16x32xf32>
    %33 = vector.broadcast %17 : vector<1x32xf32> to vector<16x32xf32>
    %34 = arith.addf %32, %33 : vector<16x32xf32>
    %35 = vector.shape_cast %34 : vector<16x32xf32> to vector<2x8x32xf32>
    %36 = vector.extract_strided_slice %27 {offsets = [0, 64], sizes = [16, 32], strides = [1, 1]} : vector<16x96xf32> to vector<16x32xf32>
    %37 = vector.broadcast %18 : vector<1x32xf32> to vector<16x32xf32>
    %38 = arith.addf %36, %37 : vector<16x32xf32>
    %39 = vector.shape_cast %38 : vector<16x32xf32> to vector<2x8x32xf32>
    %40 = arith.truncf %31 : vector<2x8x32xf32> to vector<2x8x32xbf16>
    %41 = arith.truncf %35 : vector<2x8x32xf32> to vector<2x8x32xbf16>
    "tpu.trace_start"() <{level = 10 : i32, message = "bqd,bkd->bqk"}> : () -> ()
    %cst_23 = arith.constant dense<0.000000e+00> : vector<2x8x8xf32>
    %42 = tpu.matmul %40, %41, %cst_23 {dimension_numbers = #tpu.dot_dimension_numbers<[2], [2], [1], [1], [0, 0, 0, 1, 1, 1], [0], [0]>} : vector<2x8x32xbf16>, vector<2x8x32xbf16>, vector<2x8x8xf32> -> vector<2x8x8xf32>
    "tpu.trace_stop"() : () -> ()
    %cst_24 = arith.constant 0.176776692 : f32
    %43 = vector.broadcast %cst_24 : f32 to vector<2x8x8xf32>
    %44 = arith.mulf %42, %43 : vector<2x8x8xf32>
    %45 = vector.broadcast %5 : vector<1x1x8xf32> to vector<2x8x8xf32>
    %46 = arith.addf %44, %45 : vector<2x8x8xf32>
    %cst_25 = arith.constant dense<0xFF800000> : vector<2x8xf32>
    %47 = vector.multi_reduction <maximumf>, %46, %cst_25 [2] : vector<2x8x8xf32> to vector<2x8xf32>
    %48 = vector.shape_cast %47 : vector<2x8xf32> to vector<2x8x1xf32>
    %49 = vector.broadcast %48 : vector<2x8x1xf32> to vector<2x8x8xf32>
    %50 = arith.subf %46, %49 : vector<2x8x8xf32>
    %51 = math.exp %50 : vector<2x8x8xf32>
    %cst_26 = arith.constant dense<0.000000e+00> : vector<2x8xf32>
    %52 = vector.multi_reduction <add>, %51, %cst_26 [2] : vector<2x8x8xf32> to vector<2x8xf32>
    %53 = vector.shape_cast %52 : vector<2x8xf32> to vector<2x8x1xf32>
    %54 = tpu.reciprocal %53 {approx = true} : vector<2x8x1xf32> -> vector<2x8x1xf32>
    %55 = vector.broadcast %54 : vector<2x8x1xf32> to vector<2x8x8xf32>
    %56 = arith.mulf %51, %55 : vector<2x8x8xf32>
    %57 = arith.truncf %56 : vector<2x8x8xf32> to vector<2x8x8xbf16>
    %58 = arith.truncf %39 : vector<2x8x32xf32> to vector<2x8x32xbf16>
    "tpu.trace_start"() <{level = 10 : i32, message = "bqk,bkd->bqd"}> : () -> ()
    %cst_27 = arith.constant dense<0.000000e+00> : vector<2x8x32xf32>
    %59 = tpu.matmul %57, %58, %cst_27 {dimension_numbers = #tpu.dot_dimension_numbers<[2], [1], [1], [2], [0, 0, 0, 1, 1, 2], [0], [0]>} : vector<2x8x8xbf16>, vector<2x8x32xbf16>, vector<2x8x32xf32> -> vector<2x8x32xf32>
    "tpu.trace_stop"() : () -> ()
    %60 = vector.shape_cast %59 : vector<2x8x32xf32> to vector<16x32xf32>
    %61 = arith.truncf %60 : vector<16x32xf32> to vector<16x32xbf16>
    %cst_28 = arith.constant dense<0.000000e+00> : vector<16x32xf32>
    %62 = tpu.matmul %61, %13, %cst_28 {dimension_numbers = #tpu.dot_dimension_numbers<[1], [0], [0], [1], [0, 0, 1, 1], [], []>} : vector<16x32xbf16>, vector<32x32xbf16>, vector<16x32xf32> -> vector<16x32xf32>
    %63 = vector.broadcast %19 : vector<1x32xf32> to vector<16x32xf32>
    %64 = arith.addf %62, %63 : vector<16x32xf32>
    %65 = arith.addf %11, %64 : vector<16x32xf32>
    %cst_29 = arith.constant dense<0.000000e+00> : vector<16xf32>
    %66 = vector.multi_reduction <add>, %65, %cst_29 [1] : vector<16x32xf32> to vector<16xf32>
    %67 = vector.shape_cast %66 : vector<16xf32> to vector<16x1xf32>
    %cst_30 = arith.constant 3.200000e+01 : f32
    %68 = vector.broadcast %cst_30 : f32 to vector<16x1xf32>
    %69 = arith.divf %67, %68 : vector<16x1xf32>
    %70 = vector.broadcast %69 : vector<16x1xf32> to vector<16x32xf32>
    %71 = arith.subf %65, %70 : vector<16x32xf32>
    %72 = arith.mulf %71, %71 : vector<16x32xf32>
    %cst_31 = arith.constant dense<0.000000e+00> : vector<16xf32>
    %73 = vector.multi_reduction <add>, %72, %cst_31 [1] : vector<16x32xf32> to vector<16xf32>
    %74 = vector.shape_cast %73 : vector<16xf32> to vector<16x1xf32>
    %cst_32 = arith.constant 3.200000e+01 : f32
    %75 = vector.broadcast %cst_32 : f32 to vector<16x1xf32>
    %76 = arith.divf %74, %75 : vector<16x1xf32>
    %77 = vector.broadcast %69 : vector<16x1xf32> to vector<16x32xf32>
    %78 = arith.subf %65, %77 : vector<16x32xf32>
    %cst_33 = arith.constant 9.99999974E-6 : f32
    %79 = vector.broadcast %cst_33 : f32 to vector<16x1xf32>
    %80 = arith.addf %76, %79 : vector<16x1xf32>
    %81 = math.rsqrt %80 : vector<16x1xf32>
    %82 = vector.broadcast %81 : vector<16x1xf32> to vector<16x32xf32>
    %83 = arith.mulf %78, %82 : vector<16x32xf32>
    %84 = vector.broadcast %22 : vector<1x32xf32> to vector<16x32xf32>
    %85 = arith.mulf %83, %84 : vector<16x32xf32>
    %86 = vector.broadcast %23 : vector<1x32xf32> to vector<16x32xf32>
    %87 = arith.addf %85, %86 : vector<16x32xf32>
    %88 = arith.truncf %87 : vector<16x32xf32> to vector<16x32xbf16>
    %cst_34 = arith.constant dense<0.000000e+00> : vector<16x32xf32>
    %89 = tpu.matmul %88, %14, %cst_34 {dimension_numbers = #tpu.dot_dimension_numbers<[1], [0], [0], [1], [0, 0, 1, 1], [], []>} : vector<16x32xbf16>, vector<32x32xbf16>, vector<16x32xf32> -> vector<16x32xf32>
    %90 = vector.broadcast %20 : vector<1x32xf32> to vector<16x32xf32>
    %91 = arith.addf %89, %90 : vector<16x32xf32>
    %cst_35 = arith.constant 0.000000e+00 : f32
    %92 = vector.broadcast %cst_35 : f32 to vector<16x32xf32>
    %93 = arith.maximumf %91, %92 : vector<16x32xf32>
    %94 = arith.truncf %93 : vector<16x32xf32> to vector<16x32xbf16>
    %cst_36 = arith.constant dense<0.000000e+00> : vector<16x32xf32>
    %95 = tpu.matmul %94, %15, %cst_36 {dimension_numbers = #tpu.dot_dimension_numbers<[1], [0], [0], [1], [0, 0, 1, 1], [], []>} : vector<16x32xbf16>, vector<32x32xbf16>, vector<16x32xf32> -> vector<16x32xf32>
    %96 = vector.broadcast %21 : vector<1x32xf32> to vector<16x32xf32>
    %97 = arith.addf %95, %96 : vector<16x32xf32>
    %98 = arith.addf %87, %97 : vector<16x32xf32>
    %cst_37 = arith.constant dense<0.000000e+00> : vector<16xf32>
    %99 = vector.multi_reduction <add>, %98, %cst_37 [1] : vector<16x32xf32> to vector<16xf32>
    %100 = vector.shape_cast %99 : vector<16xf32> to vector<16x1xf32>
    %cst_38 = arith.constant 3.200000e+01 : f32
    %101 = vector.broadcast %cst_38 : f32 to vector<16x1xf32>
    %102 = arith.divf %100, %101 : vector<16x1xf32>
    %103 = vector.broadcast %102 : vector<16x1xf32> to vector<16x32xf32>
    %104 = arith.subf %98, %103 : vector<16x32xf32>
    %105 = arith.mulf %104, %104 : vector<16x32xf32>
    %cst_39 = arith.constant dense<0.000000e+00> : vector<16xf32>
    %106 = vector.multi_reduction <add>, %105, %cst_39 [1] : vector<16x32xf32> to vector<16xf32>
    %107 = vector.shape_cast %106 : vector<16xf32> to vector<16x1xf32>
    %cst_40 = arith.constant 3.200000e+01 : f32
    %108 = vector.broadcast %cst_40 : f32 to vector<16x1xf32>
    %109 = arith.divf %107, %108 : vector<16x1xf32>
    %110 = vector.broadcast %102 : vector<16x1xf32> to vector<16x32xf32>
    %111 = arith.subf %98, %110 : vector<16x32xf32>
    %cst_41 = arith.constant 9.99999974E-6 : f32
    %112 = vector.broadcast %cst_41 : f32 to vector<16x1xf32>
    %113 = arith.addf %109, %112 : vector<16x1xf32>
    %114 = math.rsqrt %113 : vector<16x1xf32>
    %115 = vector.broadcast %114 : vector<16x1xf32> to vector<16x32xf32>
    %116 = arith.mulf %111, %115 : vector<16x32xf32>
    %117 = vector.broadcast %24 : vector<1x32xf32> to vector<16x32xf32>
    %118 = arith.mulf %116, %117 : vector<16x32xf32>
    %119 = vector.broadcast %25 : vector<1x32xf32> to vector<16x32xf32>
    %120 = arith.addf %118, %119 : vector<16x32xf32>
    %c64_42 = arith.constant 64 : index
    %c0_43 = arith.constant 0 : index
    %121 = vector.load %arg5[%c64_42, %c0_43] : memref<192x96xbf16, #tpu.memory_space<vmem>>, vector<32x96xbf16>
    %c96 = arith.constant 96 : index
    %c0_44 = arith.constant 0 : index
    %122 = vector.load %arg5[%c96, %c0_44] : memref<192x96xbf16, #tpu.memory_space<vmem>>, vector<32x32xbf16>
    %c96_45 = arith.constant 96 : index
    %c32_46 = arith.constant 32 : index
    %123 = vector.load %arg5[%c96_45, %c32_46] : memref<192x96xbf16, #tpu.memory_space<vmem>>, vector<32x32xbf16>
    %c96_47 = arith.constant 96 : index
    %c64_48 = arith.constant 64 : index
    %124 = vector.load %arg5[%c96_47, %c64_48] : memref<192x96xbf16, #tpu.memory_space<vmem>>, vector<32x32xbf16>
    %c10 = arith.constant 10 : index
    %c0_49 = arith.constant 0 : index
    %125 = vector.load %arg6[%c10, %c0_49] : memref<23x32xf32, #tpu.memory_space<vmem>>, vector<1x32xf32>
    %c11 = arith.constant 11 : index
    %c0_50 = arith.constant 0 : index
    %126 = vector.load %arg6[%c11, %c0_50] : memref<23x32xf32, #tpu.memory_space<vmem>>, vector<1x32xf32>
    %c12 = arith.constant 12 : index
    %c0_51 = arith.constant 0 : index
    %127 = vector.load %arg6[%c12, %c0_51] : memref<23x32xf32, #tpu.memory_space<vmem>>, vector<1x32xf32>
    %c13 = arith.constant 13 : index
    %c0_52 = arith.constant 0 : index
    %128 = vector.load %arg6[%c13, %c0_52] : memref<23x32xf32, #tpu.memory_space<vmem>>, vector<1x32xf32>
    %c14 = arith.constant 14 : index
    %c0_53 = arith.constant 0 : index
    %129 = vector.load %arg6[%c14, %c0_53] : memref<23x32xf32, #tpu.memory_space<vmem>>, vector<1x32xf32>
    %c15 = arith.constant 15 : index
    %c0_54 = arith.constant 0 : index
    %130 = vector.load %arg6[%c15, %c0_54] : memref<23x32xf32, #tpu.memory_space<vmem>>, vector<1x32xf32>
    %c16 = arith.constant 16 : index
    %c0_55 = arith.constant 0 : index
    %131 = vector.load %arg6[%c16, %c0_55] : memref<23x32xf32, #tpu.memory_space<vmem>>, vector<1x32xf32>
    %c17 = arith.constant 17 : index
    %c0_56 = arith.constant 0 : index
    %132 = vector.load %arg6[%c17, %c0_56] : memref<23x32xf32, #tpu.memory_space<vmem>>, vector<1x32xf32>
    %c18 = arith.constant 18 : index
    %c0_57 = arith.constant 0 : index
    %133 = vector.load %arg6[%c18, %c0_57] : memref<23x32xf32, #tpu.memory_space<vmem>>, vector<1x32xf32>
    %c19 = arith.constant 19 : index
    %c0_58 = arith.constant 0 : index
    %134 = vector.load %arg6[%c19, %c0_58] : memref<23x32xf32, #tpu.memory_space<vmem>>, vector<1x32xf32>
    %135 = arith.truncf %120 : vector<16x32xf32> to vector<16x32xbf16>
    %cst_59 = arith.constant dense<0.000000e+00> : vector<16x96xf32>
    %136 = tpu.matmul %135, %121, %cst_59 {dimension_numbers = #tpu.dot_dimension_numbers<[1], [0], [0], [1], [0, 0, 1, 1], [], []>} : vector<16x32xbf16>, vector<32x96xbf16>, vector<16x96xf32> -> vector<16x96xf32>
    %137 = vector.extract_strided_slice %136 {offsets = [0, 0], sizes = [16, 32], strides = [1, 1]} : vector<16x96xf32> to vector<16x32xf32>
    %138 = vector.broadcast %125 : vector<1x32xf32> to vector<16x32xf32>
    %139 = arith.addf %137, %138 : vector<16x32xf32>
    %140 = vector.shape_cast %139 : vector<16x32xf32> to vector<2x8x32xf32>
    %141 = vector.extract_strided_slice %136 {offsets = [0, 32], sizes = [16, 32], strides = [1, 1]} : vector<16x96xf32> to vector<16x32xf32>
    %142 = vector.broadcast %126 : vector<1x32xf32> to vector<16x32xf32>
    %143 = arith.addf %141, %142 : vector<16x32xf32>
    %144 = vector.shape_cast %143 : vector<16x32xf32> to vector<2x8x32xf32>
    %145 = vector.extract_strided_slice %136 {offsets = [0, 64], sizes = [16, 32], strides = [1, 1]} : vector<16x96xf32> to vector<16x32xf32>
    %146 = vector.broadcast %127 : vector<1x32xf32> to vector<16x32xf32>
    %147 = arith.addf %145, %146 : vector<16x32xf32>
    %148 = vector.shape_cast %147 : vector<16x32xf32> to vector<2x8x32xf32>
    %149 = arith.truncf %140 : vector<2x8x32xf32> to vector<2x8x32xbf16>
    %150 = arith.truncf %144 : vector<2x8x32xf32> to vector<2x8x32xbf16>
    "tpu.trace_start"() <{level = 10 : i32, message = "bqd,bkd->bqk"}> : () -> ()
    %cst_60 = arith.constant dense<0.000000e+00> : vector<2x8x8xf32>
    %151 = tpu.matmul %149, %150, %cst_60 {dimension_numbers = #tpu.dot_dimension_numbers<[2], [2], [1], [1], [0, 0, 0, 1, 1, 1], [0], [0]>} : vector<2x8x32xbf16>, vector<2x8x32xbf16>, vector<2x8x8xf32> -> vector<2x8x8xf32>
    "tpu.trace_stop"() : () -> ()
    %cst_61 = arith.constant 0.176776692 : f32
    %152 = vector.broadcast %cst_61 : f32 to vector<2x8x8xf32>
    %153 = arith.mulf %151, %152 : vector<2x8x8xf32>
    %154 = vector.broadcast %5 : vector<1x1x8xf32> to vector<2x8x8xf32>
    %155 = arith.addf %153, %154 : vector<2x8x8xf32>
    %cst_62 = arith.constant dense<0xFF800000> : vector<2x8xf32>
    %156 = vector.multi_reduction <maximumf>, %155, %cst_62 [2] : vector<2x8x8xf32> to vector<2x8xf32>
    %157 = vector.shape_cast %156 : vector<2x8xf32> to vector<2x8x1xf32>
    %158 = vector.broadcast %157 : vector<2x8x1xf32> to vector<2x8x8xf32>
    %159 = arith.subf %155, %158 : vector<2x8x8xf32>
    %160 = math.exp %159 : vector<2x8x8xf32>
    %cst_63 = arith.constant dense<0.000000e+00> : vector<2x8xf32>
    %161 = vector.multi_reduction <add>, %160, %cst_63 [2] : vector<2x8x8xf32> to vector<2x8xf32>
    %162 = vector.shape_cast %161 : vector<2x8xf32> to vector<2x8x1xf32>
    %163 = tpu.reciprocal %162 {approx = true} : vector<2x8x1xf32> -> vector<2x8x1xf32>
    %164 = vector.broadcast %163 : vector<2x8x1xf32> to vector<2x8x8xf32>
    %165 = arith.mulf %160, %164 : vector<2x8x8xf32>
    %166 = arith.truncf %165 : vector<2x8x8xf32> to vector<2x8x8xbf16>
    %167 = arith.truncf %148 : vector<2x8x32xf32> to vector<2x8x32xbf16>
    "tpu.trace_start"() <{level = 10 : i32, message = "bqk,bkd->bqd"}> : () -> ()
    %cst_64 = arith.constant dense<0.000000e+00> : vector<2x8x32xf32>
    %168 = tpu.matmul %166, %167, %cst_64 {dimension_numbers = #tpu.dot_dimension_numbers<[2], [1], [1], [2], [0, 0, 0, 1, 1, 2], [0], [0]>} : vector<2x8x8xbf16>, vector<2x8x32xbf16>, vector<2x8x32xf32> -> vector<2x8x32xf32>
    "tpu.trace_stop"() : () -> ()
    %169 = vector.shape_cast %168 : vector<2x8x32xf32> to vector<16x32xf32>
    %170 = arith.truncf %169 : vector<16x32xf32> to vector<16x32xbf16>
    %cst_65 = arith.constant dense<0.000000e+00> : vector<16x32xf32>
    %171 = tpu.matmul %170, %122, %cst_65 {dimension_numbers = #tpu.dot_dimension_numbers<[1], [0], [0], [1], [0, 0, 1, 1], [], []>} : vector<16x32xbf16>, vector<32x32xbf16>, vector<16x32xf32> -> vector<16x32xf32>
    %172 = vector.broadcast %128 : vector<1x32xf32> to vector<16x32xf32>
    %173 = arith.addf %171, %172 : vector<16x32xf32>
    %174 = arith.addf %120, %173 : vector<16x32xf32>
    %cst_66 = arith.constant dense<0.000000e+00> : vector<16xf32>
    %175 = vector.multi_reduction <add>, %174, %cst_66 [1] : vector<16x32xf32> to vector<16xf32>
    %176 = vector.shape_cast %175 : vector<16xf32> to vector<16x1xf32>
    %cst_67 = arith.constant 3.200000e+01 : f32
    %177 = vector.broadcast %cst_67 : f32 to vector<16x1xf32>
    %178 = arith.divf %176, %177 : vector<16x1xf32>
    %179 = vector.broadcast %178 : vector<16x1xf32> to vector<16x32xf32>
    %180 = arith.subf %174, %179 : vector<16x32xf32>
    %181 = arith.mulf %180, %180 : vector<16x32xf32>
    %cst_68 = arith.constant dense<0.000000e+00> : vector<16xf32>
    %182 = vector.multi_reduction <add>, %181, %cst_68 [1] : vector<16x32xf32> to vector<16xf32>
    %183 = vector.shape_cast %182 : vector<16xf32> to vector<16x1xf32>
    %cst_69 = arith.constant 3.200000e+01 : f32
    %184 = vector.broadcast %cst_69 : f32 to vector<16x1xf32>
    %185 = arith.divf %183, %184 : vector<16x1xf32>
    %186 = vector.broadcast %178 : vector<16x1xf32> to vector<16x32xf32>
    %187 = arith.subf %174, %186 : vector<16x32xf32>
    %cst_70 = arith.constant 9.99999974E-6 : f32
    %188 = vector.broadcast %cst_70 : f32 to vector<16x1xf32>
    %189 = arith.addf %185, %188 : vector<16x1xf32>
    %190 = math.rsqrt %189 : vector<16x1xf32>
    %191 = vector.broadcast %190 : vector<16x1xf32> to vector<16x32xf32>
    %192 = arith.mulf %187, %191 : vector<16x32xf32>
    %193 = vector.broadcast %131 : vector<1x32xf32> to vector<16x32xf32>
    %194 = arith.mulf %192, %193 : vector<16x32xf32>
    %195 = vector.broadcast %132 : vector<1x32xf32> to vector<16x32xf32>
    %196 = arith.addf %194, %195 : vector<16x32xf32>
    %197 = arith.truncf %196 : vector<16x32xf32> to vector<16x32xbf16>
    %cst_71 = arith.constant dense<0.000000e+00> : vector<16x32xf32>
    %198 = tpu.matmul %197, %123, %cst_71 {dimension_numbers = #tpu.dot_dimension_numbers<[1], [0], [0], [1], [0, 0, 1, 1], [], []>} : vector<16x32xbf16>, vector<32x32xbf16>, vector<16x32xf32> -> vector<16x32xf32>
    %199 = vector.broadcast %129 : vector<1x32xf32> to vector<16x32xf32>
    %200 = arith.addf %198, %199 : vector<16x32xf32>
    %cst_72 = arith.constant 0.000000e+00 : f32
    %201 = vector.broadcast %cst_72 : f32 to vector<16x32xf32>
    %202 = arith.maximumf %200, %201 : vector<16x32xf32>
    %203 = arith.truncf %202 : vector<16x32xf32> to vector<16x32xbf16>
    %cst_73 = arith.constant dense<0.000000e+00> : vector<16x32xf32>
    %204 = tpu.matmul %203, %124, %cst_73 {dimension_numbers = #tpu.dot_dimension_numbers<[1], [0], [0], [1], [0, 0, 1, 1], [], []>} : vector<16x32xbf16>, vector<32x32xbf16>, vector<16x32xf32> -> vector<16x32xf32>
    %205 = vector.broadcast %130 : vector<1x32xf32> to vector<16x32xf32>
    %206 = arith.addf %204, %205 : vector<16x32xf32>
    %207 = arith.addf %196, %206 : vector<16x32xf32>
    %cst_74 = arith.constant dense<0.000000e+00> : vector<16xf32>
    %208 = vector.multi_reduction <add>, %207, %cst_74 [1] : vector<16x32xf32> to vector<16xf32>
    %209 = vector.shape_cast %208 : vector<16xf32> to vector<16x1xf32>
    %cst_75 = arith.constant 3.200000e+01 : f32
    %210 = vector.broadcast %cst_75 : f32 to vector<16x1xf32>
    %211 = arith.divf %209, %210 : vector<16x1xf32>
    %212 = vector.broadcast %211 : vector<16x1xf32> to vector<16x32xf32>
    %213 = arith.subf %207, %212 : vector<16x32xf32>
    %214 = arith.mulf %213, %213 : vector<16x32xf32>
    %cst_76 = arith.constant dense<0.000000e+00> : vector<16xf32>
    %215 = vector.multi_reduction <add>, %214, %cst_76 [1] : vector<16x32xf32> to vector<16xf32>
    %216 = vector.shape_cast %215 : vector<16xf32> to vector<16x1xf32>
    %cst_77 = arith.constant 3.200000e+01 : f32
    %217 = vector.broadcast %cst_77 : f32 to vector<16x1xf32>
    %218 = arith.divf %216, %217 : vector<16x1xf32>
    %219 = vector.broadcast %211 : vector<16x1xf32> to vector<16x32xf32>
    %220 = arith.subf %207, %219 : vector<16x32xf32>
    %cst_78 = arith.constant 9.99999974E-6 : f32
    %221 = vector.broadcast %cst_78 : f32 to vector<16x1xf32>
    %222 = arith.addf %218, %221 : vector<16x1xf32>
    %223 = math.rsqrt %222 : vector<16x1xf32>
    %224 = vector.broadcast %223 : vector<16x1xf32> to vector<16x32xf32>
    %225 = arith.mulf %220, %224 : vector<16x32xf32>
    %226 = vector.broadcast %133 : vector<1x32xf32> to vector<16x32xf32>
    %227 = arith.mulf %225, %226 : vector<16x32xf32>
    %228 = vector.broadcast %134 : vector<1x32xf32> to vector<16x32xf32>
    %229 = arith.addf %227, %228 : vector<16x32xf32>
    %c128 = arith.constant 128 : index
    %c0_79 = arith.constant 0 : index
    %230 = vector.load %arg5[%c128, %c0_79] : memref<192x96xbf16, #tpu.memory_space<vmem>>, vector<64x32xbf16>
    %c20 = arith.constant 20 : index
    %c0_80 = arith.constant 0 : index
    %231 = vector.load %arg6[%c20, %c0_80] : memref<23x32xf32, #tpu.memory_space<vmem>>, vector<1x32xf32>
    %c21 = arith.constant 21 : index
    %c0_81 = arith.constant 0 : index
    %232 = vector.load %arg6[%c21, %c0_81] : memref<23x32xf32, #tpu.memory_space<vmem>>, vector<1x32xf32>
    %233 = vector.shape_cast %232 : vector<1x32xf32> to vector<1x1x32xf32>
    %c22 = arith.constant 22 : index
    %c0_82 = arith.constant 0 : index
    %234 = vector.load %arg6[%c22, %c0_82] : memref<23x32xf32, #tpu.memory_space<vmem>>, vector<1x1xf32>
    %c0_83 = arith.constant 0 : index
    %c0_84 = arith.constant 0 : index
    %235 = vector.load %arg3[%c0_83, %c0_84] : memref<2x32xf32, #tpu.memory_space<vmem>>, vector<2x32xf32>
    %236 = vector.shape_cast %235 : vector<2x32xf32> to vector<2x1x32xf32>
    %237 = vector.shape_cast %236 : vector<2x1x32xf32> to vector<2x1x32xf32>
    %238 = vector.broadcast %237 : vector<2x1x32xf32> to vector<2x8x32xf32>
    %239 = vector.shape_cast %229 : vector<16x32xf32> to vector<2x8x32xf32>
    %240 = tpu.concatenate %239, %238 in 2 : vector<2x8x32xf32>, vector<2x8x32xf32> -> vector<2x8x64xf32>
    %241 = vector.shape_cast %240 : vector<2x8x64xf32> to vector<16x64xf32>
    %242 = arith.truncf %241 : vector<16x64xf32> to vector<16x64xbf16>
    %cst_85 = arith.constant dense<0.000000e+00> : vector<16x32xf32>
    %243 = tpu.matmul %242, %230, %cst_85 {dimension_numbers = #tpu.dot_dimension_numbers<[1], [0], [0], [1], [0, 0, 1, 1], [], []>} : vector<16x64xbf16>, vector<64x32xbf16>, vector<16x32xf32> -> vector<16x32xf32>
    %244 = vector.broadcast %231 : vector<1x32xf32> to vector<16x32xf32>
    %245 = arith.addf %243, %244 : vector<16x32xf32>
    %246 = vector.shape_cast %245 : vector<16x32xf32> to vector<2x8x32xf32>
    %c0_86 = arith.constant 0 : index
    %c0_87 = arith.constant 0 : index
    %c0_88 = arith.constant 0 : index
    %247 = vector.load %arg2[%c0_86, %c0_87, %c0_88] : memref<2x8x32xf32, #tpu.memory_space<vmem>>, vector<2x8x32xf32>
    %248 = arith.mulf %246, %247 : vector<2x8x32xf32>
    %249 = vector.broadcast %233 : vector<1x1x32xf32> to vector<2x8x32xf32>
    %250 = arith.mulf %248, %249 : vector<2x8x32xf32>
    %cst_89 = arith.constant dense<0.000000e+00> : vector<2x8xf32>
    %251 = vector.multi_reduction <add>, %250, %cst_89 [2] : vector<2x8x32xf32> to vector<2x8xf32>
    %252 = vector.broadcast %234 : vector<1x1xf32> to vector<2x8xf32>
    %253 = arith.addf %251, %252 : vector<2x8xf32>
    %254 = arith.negf %253 : vector<2x8xf32>
    %255 = math.exp %254 : vector<2x8xf32>
    %cst_90 = arith.constant 1.000000e+00 : f32
    %256 = vector.broadcast %cst_90 : f32 to vector<2x8xf32>
    %257 = arith.addf %256, %255 : vector<2x8xf32>
    %258 = arith.divf %256, %257 : vector<2x8xf32>
    %c0_91 = arith.constant 0 : index
    %c0_92 = arith.constant 0 : index
    %259 = vector.load %arg7[%c0_91, %c0_92] : memref<2x8xf32, #tpu.memory_space<vmem>>, vector<2x8xf32>
    tpu.vector_store %arg7[%c0_91, %c0_92], %258 {strides = array<i32>} : memref<2x8xf32, #tpu.memory_space<vmem>>, vector<2x8xf32>,
    return
  }
  func.func @transform_0(%arg0: i32) -> (i32, i32, i32) {
    %c0_i32 = arith.constant 0 : i32
    %c0_i32_0 = arith.constant 0 : i32
    %c0_i32_1 = arith.constant 0 : i32
    return %arg0, %c0_i32, %c0_i32_0 : i32, i32, i32
  }
  func.func @transform_1(%arg0: i32) -> (i32, i32, i32) {
    %c0_i32 = arith.constant 0 : i32
    %c0_i32_0 = arith.constant 0 : i32
    %c0_i32_1 = arith.constant 0 : i32
    return %arg0, %c0_i32, %c0_i32_0 : i32, i32, i32
  }
  func.func @transform_2(%arg0: i32) -> (i32, i32) {
    %c0_i32 = arith.constant 0 : i32
    %c0_i32_0 = arith.constant 0 : i32
    return %arg0, %c0_i32 : i32, i32
  }
  func.func @transform_3(%arg0: i32) -> (i32, i32) {
    %c0_i32 = arith.constant 0 : i32
    %c0_i32_0 = arith.constant 0 : i32
    %c0_i32_1 = arith.constant 0 : i32
    return %c0_i32, %c0_i32_0 : i32, i32
  }
  func.func @transform_4(%arg0: i32) -> (i32, i32) {
    %c0_i32 = arith.constant 0 : i32
    %c0_i32_0 = arith.constant 0 : i32
    %c0_i32_1 = arith.constant 0 : i32
    return %c0_i32, %c0_i32_0 : i32, i32
  }
  func.func @transform_5(%arg0: i32) -> (i32, i32) {
    %c0_i32 = arith.constant 0 : i32
    %c0_i32_0 = arith.constant 0 : i32
    %c0_i32_1 = arith.constant 0 : i32
    return %c0_i32, %c0_i32_0 : i32, i32
  }
  func.func @transform_6(%arg0: i32) -> (i32, i32) {
    %c0_i32 = arith.constant 0 : i32
    %c0_i32_0 = arith.constant 0 : i32
    return %arg0, %c0_i32 : i32, i32
  }
}

</mosaic_0001>

<bundles_post_ra>
// kernel: sasrec_forward.1
= control target key start
LH: loop header
LB: loop body
LE: loop exit
PB: predicated region body
PF: predicated region fallthrough
CT: control target
= control target key end

     0   :  { %v1708_v1 = vmov 0.0   ;;  %vm1709_vm0 = vmmov 0   ;;  %vm65_vm1 = vcmask 261120   ;;  %s1710_s9 = smov 32   ;;  %s2064_s0 = inlined_call_operand.vmem [shape: f32[2,8,32], index: 0, kind: input, shape index: {}]   ;;  %s2065_s1 = inlined_call_operand.vmem [shape: f32[2,8,32], index: 1, kind: input, shape index: {}]   ;;  %s2066_s2 = inlined_call_operand.vmem [shape: f32[2,32], index: 2, kind: input, shape index: {}]   ;;  %s2067_s3 = inlined_call_operand.vmem [shape: f32[8,32], index: 3, kind: input, shape index: {}]   ;;  %s2068_s4 = inlined_call_operand.vmem [shape: bf16[192,96], index: 4, kind: input, shape index: {}]   ;;  %s2069_s5 = inlined_call_operand.vmem [shape: f32[23,32], index: 5, kind: input, shape index: {}]   ;;  %s2070_s6 = inlined_call_operand.hbm [shape: f32[2,8], index: 6, kind: output, shape index: {}]  }
   0x1   :  { %v1632_v0 = vld [vmem:[%s2068_s4] sm:$0xff]   ;;  %1493 = vmatprep.subr.bf16.mxu1 %v1708_v1  ;;  %v1633_v2 = vld [vmem:[%s2068_s4 + $0x8] sm:$0xff]   ;;  %1507 = vmatprep.subr.bf16.mxu0 %v1708_v1 }
   0x2   :  { %1494 = vmatpush3.bf16.msra.mxu1 %v1632_v0  ;;  %1497 = vmatprep.mubr.msk.bf16.mxu1 %vm1709_vm0, %v1708_v1  ;;  %v29_v3 = vld [vmem:[%s2064_s0] sm:$0xff]  ;;  %v30_v4 = vld [vmem:[%s2064_s0 + $0x8] sm:$0xff] }
   0x3   :  { %v31_v5 = vld [vmem:[%s2067_s3] sm:$0xff]  ;;  %1495 = vmatprep.subr.bf16.mxu1 %v1708_v1  ;;  %1509 = vmatprep.mubr.msk.bf16.mxu0 %vm1709_vm0, %v1708_v1 }
   0x4   :  { %v1771_v6 = vadd.f32 %v31_v5, %v29_v3  ;;  %v1773_v7 = vadd.f32 %v31_v5, %v30_v4  ;;  %v1398_v8 = vld [vmem:[%s2069_s5 + $0x1] ss:$0 sm:$0xff] }
   0x5   :  { %121 = vrot.lane.b32.xlu0 %v1398_v8, %s1710_s9 }
   0x6   :  { %v52_v9 = vpack.c.bf16 %v1773_v7, %v1771_v6  ;;  %1496 = vmatpush3.bf16.msra.mxu1 %v1633_v2 }
   0x7   :  { %1501 = vmatprep.subr.bf16.mxu1 %v1708_v1 }
   0x9   :  { %1498 = vmatmul.mubr.msk.bf16.vlgmr.msra.gmra.mrb[0].mxu1 %vm65_vm1, %v52_v9 }
   0xa   :  { %1503 = vmatprep.mubr.msk.bf16.mxu1 %vm1709_vm0, %v1708_v1 }
   0xb   :  { %11 = vsyncpa [#allocation3], 0  ;;  %s1711_s0 = smov 96   ;;  %v1397_v19 = vld [vmem:[%s2069_s5] ss:$0 sm:$0xff]  ;;  %v25_v28 = vlaneseq  ;;  %vm242_vm3 = vcmask 64512  }
   0xc   :  { %v1712_v31 = vmov -1e+30   ;;  %v1399_v46 = vld [vmem:[%s2069_s5 + $0x2] ss:$0 sm:$0xff]  ;;  %s1713_s13 = smov 64   ;;  %vm275_vm4 = vcmask 1043456  }
   0xd   :  { %v1807_v29 = vand.u32 127, %v25_v28  ;;  %vm1286_vm5 = vcmask 523264   ;;  %vm1375_vm6 = vcmask 1041409   ;;  %vm1378_vm7 = vcmask 58368  }
   0xf   :  { %vm27_vm2 = vcmp.lt.s32.totalorder %v1807_v29, 5 }
  0x10   :  { %v1810_v32 = vsel %vm27_vm2, 0.0, %v1712_v31 }
  0x77   :  { %v122_v10 = vpop.permute.xlu0 %121 }
  0xdc   :  { %v1787_v11 = vpop.f32.mrb[0].mxu1 }
  0xdd   :  { %v124_v12 = vadd.f32 %v122_v10, %v1787_v11  ;;  %v1499_v13 = vpop.f32.mrb[1].mxu1  ;;  %v114_v23 = vadd.f32 %v1397_v19, %v1787_v11 }
  0xde   :  { %v106_v14 = vpop.f32.mrb[2].mxu1  ;;  %v1634_v13 = vld [vmem:[%s2068_s4 + $0x10] sm:$0xff]  }
  0xdf   :  { %v1500_v15 = vpop.f32.mrb[3].mxu1  ;;  %v138_v16 = vpack.c.bf16 %v124_v12, %v124_v12  ;;  %v125_v17 = vadd.f32 %v122_v10, %v106_v14  ;;  %v115_v25 = vadd.f32 %v1397_v19, %v106_v14  ;;  %v136_v26 = vpack.c.bf16 %v114_v23, %v114_v23 }
  0xe1   :  { %141 = vrot.lane.b32.xlu0 %v138_v16, %s1711_s0  ;;  %v139_v18 = vpack.c.bf16 %v125_v17, %v125_v17  ;;  %v137_v27 = vpack.c.bf16 %v115_v25, %v115_v25 }
  0xe3   :  { %190 = vrot.lane.b32.xlu1 %v139_v18, %s1711_s0 }
 0x153   :  { %v142_v20 = vpop.permute.xlu0 %141 }
 0x154   :  { %v147_v21 = vsel %vm65_vm1, %v142_v20, 0 }
 0x155   :  { %1502 = vmatpush3.bf16.xpose.msra.mxu1 %v147_v21  ;;  %v191_v22 = vpop.permute.xlu1 %190 }
 0x156   :  { %v196_v24 = vsel %vm65_vm1, %v191_v22, 0  ;;  %1513 = vmatprep.subr.bf16.mxu1 %v1708_v1 }
 0x157   :  { %1508 = vmatpush3.bf16.xpose.msra.mxu0 %v196_v24  ;;  %v1404_v24 = vld [vmem:[%s2069_s5 + $0x3] ss:$0 sm:$0xff] }
 0x158   :  { %1519 = vmatprep.subr.bf16.mxu0 %v1708_v1 }
 0x15c   :  { %1504 = vmatmul.mubr.msk.bf16.vlgmr.msra.gmra.mrb[4].mxu1 %vm65_vm1, %v136_v26 }
 0x15d   :  { %1515 = vmatprep.mubr.msk.bf16.mxu1 %vm1709_vm0, %v1708_v1 }
 0x15e   :  { %1510 = vmatmul.mubr.msk.bf16.vlgmr.msra.gmra.mrb[0].mxu0 %vm65_vm1, %v137_v27 }
 0x15f   :  { %1521 = vmatprep.mubr.msk.bf16.mxu0 %vm1709_vm0, %v1708_v1 }
 0x22f   :  { %v183_v30 = vpop.f32.mrb[4].mxu1 }
 0x230   :  { %v238_v33 = vmul.f32 0.17677669, %v183_v30  ;;  %v1505_v34 = vpop.f32.mrb[5].mxu1 }
 0x231   :  { %v186_v35 = vpop.f32.mrb[6].mxu1  ;;  %v232_v36 = vpop.f32.mrb[0].mxu0 }
 0x232   :  { %v239_v37 = vmul.f32 0.17677669, %v232_v36  ;;  %v1506_v38 = vpop.f32.mrb[7].mxu1  ;;  %v1511_v39 = vpop.f32.mrb[1].mxu0  ;;  %v240_v40 = vadd.f32 %v238_v33, %v1810_v32 }
 0x233   :  { %v235_v41 = vpop.f32.mrb[2].mxu0 }
 0x234   :  { %v1512_v42 = vpop.f32.mrb[3].mxu0  ;;  %v243_v43 = vsel %vm242_vm3, %v240_v40, -inf  ;;  %v241_v44 = vadd.f32 %v239_v37, %v1810_v32 }
 0x235   :  { %244 = vmax.xlane.f32.xlu1 %v243_v43 }
 0x236   :  { %v246_v45 = vsel %vm242_vm3, %v241_v44, -inf }
 0x237   :  { %247 = vmax.xlane.f32.xlu0 %v246_v45 }
 0x24d   :  { %131 = vrot.lane.b32.xlu0 %v1399_v46, %s1713_s13 }
 0x2c2   :  { %v245_v47 = vpop.xlane.xlu1 %244 }
 0x2c3   :  { %v249_v48 = vsub.f32 %v240_v40, %v245_v47 }
 0x2c4   :  { %v248_v49 = vpop.xlane.xlu0 %247 }
 0x2c5   :  { %v251_v50 = vmul.f32 1.442695, %v249_v48  ;;  %v250_v51 = vsub.f32 %v241_v44, %v248_v49 }
 0x2c7   :  { %1644 = vpow2.f32 %v251_v50  ;;  %v253_v52 = vmul.f32 1.442695, %v250_v51 }
 0x2c8   :  { %v132_v53 = vpop.permute.xlu0 %131 }
 0x2c9   :  { %1646 = vpow2.f32 %v253_v52  ;;  %v135_v54 = vadd.f32 %v132_v53, %v106_v14  ;;  %v134_v60 = vadd.f32 %v132_v53, %v1787_v11  ;;  %v1635_v14 = vld [vmem:[%s2068_s4 + $0x18] sm:$0xff]  }
 0x2cb   :  { %v268_v55 = vpack.c.bf16 %v135_v54, %v135_v54  ;;  %v267_v61 = vpack.c.bf16 %v134_v60, %v134_v60  ;;  %v1409_v60 = vld [vmem:[%s2069_s5 + $0x7] ss:$0 sm:$0xff] }
 0x2cd   :  { %320 = vrot.lane.b32.xlu0 %v268_v55, %s1713_s13 }
 0x2d1   :  { %v1645_v56 = vpop.eup %1644 }
 0x2d2   :  { %v255_v57 = vsel %vm242_vm3, %v1645_v56, 0.0 }
 0x2d3   :  { %v1647_v58 = vpop.eup %1646  ;;  %256 = vadd.xlane.f32.xlu1 %v255_v57 }
 0x2d4   :  { %v258_v59 = vsel %vm242_vm3, %v1647_v58, 0.0 }
 0x2d7   :  { %259 = vadd.xlane.f32.xlu1 %v258_v59 }
 0x2e8   :  { %270 = vrot.lane.b32.xlu1 %v267_v61, %s1713_s13 }
 0x33f   :  { %v321_v62 = vpop.permute.xlu0 %320 }
 0x340   :  { %v326_v63 = vsel %vm275_vm4, %v321_v62, 0 }
 0x341   :  { %1520 = vmatpush3.bf16.msra.mxu0 %v326_v63 }
 0x342   :  { %1533 = vmatprep.subr.bf16.mxu0 %v1708_v1 }
 0x360   :  { %v257_v0 = vpop.xlane.xlu1 %256 }
 0x361   :  { %1648 = vrcp.f32 %v257_v0 }
 0x364   :  { %v260_v2 = vpop.xlane.xlu1 %259 }
 0x365   :  { %1650 = vrcp.f32 %v260_v2 }
 0x368   :  { %v271_v3 = vpop.permute.xlu1 %270 }
 0x369   :  { %v277_v4 = vsel %vm275_vm4, %v271_v3, 0 }
 0x36a   :  { %1514 = vmatpush3.bf16.msra.mxu1 %v277_v4  ;;  %v1410_v4 = vld [vmem:[%s2069_s5 + $0x4] ss:$0 sm:$0xff] }
 0x36b   :  { %v1649_v5 = vpop.eup %1648  ;;  %1525 = vmatprep.subr.bf16.mxu1 %v1708_v1 }
 0x36c   :  { %v263_v8 = vmul.f32 %v1649_v5, %v1645_v56  ;;  %v1408_v56 = vld [vmem:[%s2069_s5 + $0x6] ss:$0 sm:$0xff] }
 0x36e   :  { %v265_v9 = vpack.c.bf16 %v263_v8, %v263_v8 }
 0x36f   :  { %v1651_v10 = vpop.eup %1650 }
 0x370   :  { %v264_v11 = vmul.f32 %v1651_v10, %v1647_v58  ;;  %1516 = vmatmul.mubr.msk.bf16.vlgmr.msra.gmra.mrb[8].mxu1 %vm242_vm3, %v265_v9 }
 0x371   :  { %1529 = vmatprep.mubr.msk.bf16.mxu1 %vm1709_vm0, %v1708_v1  ;;  %1526 = vmatpush3.bf16.msra.mxu1 %v1634_v13 }
 0x372   :  { %v266_v12 = vpack.c.bf16 %v264_v11, %v264_v11  ;;  %1527 = vmatprep.subr.bf16.mxu1 %v1708_v1 }
 0x374   :  { %1522 = vmatmul.mubr.msk.bf16.vlgmr.msra.gmra.mrb[4].mxu0 %vm242_vm3, %v266_v12 }
 0x375   :  { %1537 = vmatprep.mubr.msk.bf16.mxu0 %vm1709_vm0, %v1708_v1  ;;  %1528 = vmatpush3.bf16.msra.mxu1 %v1635_v14 }
 0x376   :  { %1541 = vmatprep.subr.bf16.mxu1 %v1708_v1 }
 0x443   :  { %v313_v15 = vpop.f32.mrb[8].mxu1 }
 0x444   :  { %v1517_v16 = vpop.f32.mrb[9].mxu1 }
 0x445   :  { %v316_v17 = vpop.f32.mrb[10].mxu1  ;;  %v1412_v16 = vld [vmem:[%s2069_s5 + $0x5] ss:$0 sm:$0xff] }
 0x446   :  { %v1518_v18 = vpop.f32.mrb[11].mxu1 }
 0x447   :  { %v362_v19 = vpop.f32.mrb[4].mxu0 }
 0x448   :  { %v368_v20 = vpack.c.bf16 %v362_v19, %v313_v15  ;;  %v1523_v21 = vpop.f32.mrb[5].mxu0 }
 0x449   :  { %v365_v22 = vpop.f32.mrb[6].mxu0 }
 0x44a   :  { %v1524_v23 = vpop.f32.mrb[7].mxu0  ;;  %1530 = vmatmul.mubr.msk.bf16.vlgmr.msra.gmra.mrb[12].mxu1 %vm65_vm1, %v368_v20 }
 0x44b   :  { %1545 = vmatprep.mubr.msk.bf16.mxu1 %vm1709_vm0, %v1708_v1 }
 0x51d   :  { %v422_v25 = vpop.f32.mrb[12].mxu1 }
 0x51e   :  { %v423_v26 = vadd.f32 %v1404_v24, %v422_v25  ;;  %v1531_v27 = vpop.f32.mrb[13].mxu1 }
 0x51f   :  { %v425_v30 = vpop.f32.mrb[14].mxu1 }
 0x520   :  { %v426_v31 = vadd.f32 %v1404_v24, %v425_v30  ;;  %v1532_v33 = vpop.f32.mrb[15].mxu1  ;;  %v429_v34 = vadd.f32 %v423_v26, %v1771_v6 }
 0x522   :  { %v431_v35 = vsel %vm65_vm1, %v429_v34, 0.0  ;;  %v430_v36 = vadd.f32 %v426_v31, %v1773_v7 }
 0x523   :  { %432 = vadd.xlane.f32.xlu0 %v431_v35 }
 0x524   :  { %v434_v37 = vsel %vm65_vm1, %v430_v36, 0.0 }
 0x525   :  { %435 = vadd.xlane.f32.xlu1 %v434_v37 }
 0x536   :  { %475 = vrot.lane.b32.xlu1 %v1634_v13, %s1711_s0 }
 0x53a   :  { %532 = vrot.lane.b32.xlu1 %v1634_v13, %s1713_s13 }
 0x53e   :  { %534 = vrot.lane.b32.xlu1 %v1635_v14, %s1713_s13 }
 0x5b0   :  { %v433_v38 = vpop.xlane.xlu0 %432 }
 0x5b1   :  { %v438_v39 = vmul.f32 0.03125, %v433_v38 }
 0x5b2   :  { %v436_v40 = vpop.xlane.xlu1 %435 }
 0x5b3   :  { %v440_v41 = vsub.f32 %v429_v34, %v438_v39  ;;  %v439_v42 = vmul.f32 0.03125, %v436_v40  ;;  %v1636_v40 = vld [vmem:[%s2068_s4 + $0x20] sm:$0xff]  }
 0x5b5   :  { %v441_v6 = vsub.f32 %v430_v36, %v439_v42  ;;  %v442_v43 = vmul.f32 %v440_v41, %v440_v41  ;;  %v1420_v42 = vld [vmem:[%s2069_s5 + $0xb] ss:$0 sm:$0xff] }
 0x5b6   :  { %v476_v46 = vpop.permute.xlu1 %475 }
 0x5b7   :  { %v444_v44 = vsel %vm65_vm1, %v442_v43, 0.0  ;;  %v443_v7 = vmul.f32 %v441_v6, %v441_v6  ;;  %1534 = vmatpush3.bf16.msra.mxu0 %v476_v46 }
 0x5b8   :  { %445 = vadd.xlane.f32.xlu0 %v444_v44  ;;  %1535 = vmatprep.subr.bf16.mxu0 %v1708_v1 }
 0x5b9   :  { %v447_v45 = vsel %vm65_vm1, %v443_v7, 0.0 }
 0x5ba   :  { %v533_v2 = vpop.permute.xlu1 %532 }
 0x5bb   :  { %1542 = vmatpush3.bf16.msra.mxu1 %v533_v2 }
 0x5bc   :  { %448 = vadd.xlane.f32.xlu0 %v447_v45  ;;  %1543 = vmatprep.subr.bf16.mxu1 %v1708_v1 }
 0x5be   :  { %v535_v3 = vpop.permute.xlu1 %534 }
 0x5bf   :  { %1544 = vmatpush3.bf16.msra.mxu1 %v535_v3 }
 0x5c0   :  { %1557 = vmatprep.subr.bf16.mxu1 %v1708_v1 }
 0x5d2   :  { %477 = vrot.lane.b32.xlu0 %v1635_v14, %s1711_s0 }
 0x645   :  { %v446_v47 = vpop.xlane.xlu0 %445 }
 0x646   :  { %v450_v48 = vmul.f32 0.03125, %v446_v47 }
 0x648   :  { %v452_v49 = vadd.f32 1e-05, %v450_v48 }
 0x649   :  { %v449_v50 = vpop.xlane.xlu0 %448 }
 0x64a   :  { %1652 = vrsqrt.f32 %v452_v49  ;;  %v451_v51 = vmul.f32 0.03125, %v449_v50  ;;  %v1414_v49 = vld [vmem:[%s2069_s5 + $0x8] ss:$0 sm:$0xff] }
 0x64c   :  { %v453_v52 = vadd.f32 1e-05, %v451_v51 }
 0x64d   :  { %v478_v53 = vpop.permute.xlu0 %477 }
 0x64e   :  { %1654 = vrsqrt.f32 %v453_v52  ;;  %1536 = vmatpush3.bf16.msra.mxu0 %v478_v53  ;;  %v1415_v53 = vld [vmem:[%s2069_s5 + $0x9] ss:$0 sm:$0xff] }
 0x64f   :  { %1549 = vmatprep.subr.bf16.mxu0 %v1708_v1 }
 0x654   :  { %v1653_v54 = vpop.eup %1652 }
 0x655   :  { %v456_v55 = vmul.f32 %v1653_v54, %v440_v41  ;;  %v1637_v41 = vld [vmem:[%s2068_s4 + $0x28] sm:$0xff]  }
 0x657   :  { %v462_v58 = vmul.f32 %v1408_v56, %v456_v55 }
 0x658   :  { %v1655_v57 = vpop.eup %1654 }
 0x659   :  { %v457_v59 = vmul.f32 %v1655_v57, %v441_v6  ;;  %v468_v62 = vadd.f32 %v1409_v60, %v462_v58 }
 0x65b   :  { %v463_v61 = vmul.f32 %v1408_v56, %v457_v59 }
 0x65d   :  { %v469_v63 = vadd.f32 %v1409_v60, %v463_v61 }
 0x65f   :  { %v470_v0 = vpack.c.bf16 %v469_v63, %v468_v62 }
 0x661   :  { %1538 = vmatmul.mubr.msk.bf16.vlgmr.msra.gmra.mrb[8].mxu0 %vm65_vm1, %v470_v0 }
 0x662   :  { %1553 = vmatprep.mubr.msk.bf16.mxu0 %vm1709_vm0, %v1708_v1  ;;  %1550 = vmatpush3.bf16.msra.mxu0 %v1636_v40 }
 0x663   :  { %1551 = vmatprep.subr.bf16.mxu0 %v1708_v1 }
 0x666   :  { %1552 = vmatpush3.bf16.msra.mxu0 %v1637_v41 }
 0x667   :  { %1563 = vmatprep.subr.bf16.mxu0 %v1708_v1 }
 0x734   :  { %v518_v5 = vpop.f32.mrb[8].mxu0 }
 0x735   :  { %v519_v8 = vadd.f32 %v1410_v4, %v518_v5  ;;  %v1539_v9 = vpop.f32.mrb[9].mxu0 }
 0x736   :  { %v521_v10 = vpop.f32.mrb[10].mxu0 }
 0x737   :  { %v522_v11 = vadd.f32 %v1410_v4, %v521_v10  ;;  %v1540_v12 = vpop.f32.mrb[11].mxu0  ;;  %v525_v13 = vmax.f32 %v519_v8, 0.0  ;;  %v1419_v4 = vld [vmem:[%s2069_s5 + $0xa] ss:$0 sm:$0xff] }
 0x739   :  { %v526_v14 = vmax.f32 %v522_v11, 0.0 }
 0x73b   :  { %v527_v15 = vpack.c.bf16 %v526_v14, %v525_v13 }
 0x73d   :  { %1546 = vmatmul.mubr.msk.bf16.vlgmr.msra.gmra.mrb[16].mxu1 %vm65_vm1, %v527_v15 }
 0x73e   :  { %1559 = vmatprep.mubr.msk.bf16.mxu1 %vm1709_vm0, %v1708_v1 }
 0x810   :  { %v575_v17 = vpop.f32.mrb[16].mxu1 }
 0x811   :  { %v576_v18 = vadd.f32 %v1412_v16, %v575_v17  ;;  %v1547_v19 = vpop.f32.mrb[17].mxu1 }
 0x812   :  { %v578_v20 = vpop.f32.mrb[18].mxu1 }
 0x813   :  { %v579_v21 = vadd.f32 %v1412_v16, %v578_v20  ;;  %v1548_v22 = vpop.f32.mrb[19].mxu1  ;;  %v582_v23 = vadd.f32 %v576_v18, %v468_v62 }
 0x815   :  { %v584_v24 = vsel %vm65_vm1, %v582_v23, 0.0  ;;  %v583_v25 = vadd.f32 %v579_v21, %v469_v63 }
 0x816   :  { %585 = vadd.xlane.f32.xlu0 %v584_v24 }
 0x817   :  { %v587_v26 = vsel %vm65_vm1, %v583_v25, 0.0 }
 0x818   :  { %588 = vadd.xlane.f32.xlu1 %v587_v26 }
 0x829   :  { %708 = vrot.lane.b32.xlu1 %v1420_v42, %s1710_s9 }
 0x8a3   :  { %v586_v27 = vpop.xlane.xlu0 %585 }
 0x8a4   :  { %v590_v30 = vmul.f32 0.03125, %v586_v27 }
 0x8a5   :  { %v589_v31 = vpop.xlane.xlu1 %588 }
 0x8a6   :  { %v592_v33 = vsub.f32 %v582_v23, %v590_v30  ;;  %v591_v34 = vmul.f32 0.03125, %v589_v31  ;;  %v1421_v31 = vld [vmem:[%s2069_s5 + $0xc] ss:$0 sm:$0xff] }
 0x8a8   :  { %v593_v35 = vsub.f32 %v583_v25, %v591_v34  ;;  %v594_v36 = vmul.f32 %v592_v33, %v592_v33 }
 0x8a9   :  { %v709_v58 = vpop.permute.xlu1 %708 }
 0x8aa   :  { %v596_v37 = vsel %vm65_vm1, %v594_v36, 0.0  ;;  %v595_v38 = vmul.f32 %v593_v35, %v593_v35 }
 0x8ab   :  { %597 = vadd.xlane.f32.xlu0 %v596_v37 }
 0x8ac   :  { %v599_v39 = vsel %vm65_vm1, %v595_v38, 0.0 }
 0x8af   :  { %600 = vadd.xlane.f32.xlu0 %v599_v39 }
 0x938   :  { %v598_v6 = vpop.xlane.xlu0 %597 }
 0x939   :  { %v602_v43 = vmul.f32 0.03125, %v598_v6 }
 0x93b   :  { %v604_v44 = vadd.f32 1e-05, %v602_v43 }
 0x93c   :  { %v601_v7 = vpop.xlane.xlu0 %600 }
 0x93d   :  { %1656 = vrsqrt.f32 %v604_v44  ;;  %v603_v45 = vmul.f32 0.03125, %v601_v7 }
 0x93f   :  { %v605_v46 = vadd.f32 1e-05, %v603_v45 }
 0x941   :  { %1658 = vrsqrt.f32 %v605_v46 }
 0x947   :  { %v1657_v47 = vpop.eup %1656 }
 0x948   :  { %v608_v48 = vmul.f32 %v1657_v47, %v592_v33 }
 0x94a   :  { %v614_v51 = vmul.f32 %v1414_v49, %v608_v48 }
 0x94b   :  { %v1659_v50 = vpop.eup %1658 }
 0x94c   :  { %v609_v52 = vmul.f32 %v1659_v50, %v593_v35  ;;  %v1903_v55 = vadd.f32 %v1415_v53, %v614_v51 }
 0x94e   :  { %v615_v54 = vmul.f32 %v1414_v49, %v609_v52 }
 0x950   :  { %v1905_v56 = vadd.f32 %v1415_v53, %v615_v54 }
 0x952   :  { %v640_v57 = vpack.c.bf16 %v1905_v56, %v1903_v55 }
 0x954   :  { %1554 = vmatmul.mubr.msk.bf16.vlgmr.msra.gmra.mrb[12].mxu0 %vm65_vm1, %v640_v57 }
 0x955   :  { %1565 = vmatprep.mubr.msk.bf16.mxu0 %vm1709_vm0, %v1708_v1 }
 0xa27   :  { %v1912_v59 = vpop.f32.mrb[12].mxu0 }
 0xa28   :  { %v711_v60 = vadd.f32 %v709_v58, %v1912_v59  ;;  %v1555_v61 = vpop.f32.mrb[13].mxu0  ;;  %v701_v10 = vadd.f32 %v1419_v4, %v1912_v59 }
 0xa29   :  { %v693_v62 = vpop.f32.mrb[14].mxu0 }
 0xa2a   :  { %v725_v63 = vpack.c.bf16 %v711_v60, %v711_v60  ;;  %v712_v0 = vadd.f32 %v709_v58, %v693_v62  ;;  %v1556_v2 = vpop.f32.mrb[15].mxu0  ;;  %v702_v12 = vadd.f32 %v1419_v4, %v693_v62  ;;  %v723_v13 = vpack.c.bf16 %v701_v10, %v701_v10  ;;  %v1639_v60 = vld [vmem:[%s2068_s4 + $0x38] sm:$0xff]  }
 0xa2c   :  { %728 = vrot.lane.b32.xlu0 %v725_v63, %s1711_s0  ;;  %v726_v3 = vpack.c.bf16 %v712_v0, %v712_v0  ;;  %v724_v14 = vpack.c.bf16 %v702_v12, %v702_v12 }
 0xa2e   :  { %777 = vrot.lane.b32.xlu1 %v726_v3, %s1711_s0 }
 0xa9e   :  { %v729_v5 = vpop.permute.xlu0 %728 }
 0xa9f   :  { %v734_v8 = vsel %vm65_vm1, %v729_v5, 0 }
 0xaa0   :  { %v778_v9 = vpop.permute.xlu1 %777  ;;  %1558 = vmatpush3.bf16.xpose.msra.mxu1 %v734_v8 }
 0xaa1   :  { %v783_v11 = vsel %vm65_vm1, %v778_v9, 0  ;;  %1569 = vmatprep.subr.bf16.mxu1 %v1708_v1  ;;  %v1426_v9 = vld [vmem:[%s2069_s5 + $0xd] ss:$0 sm:$0xff] }
 0xaa2   :  { %1564 = vmatpush3.bf16.xpose.msra.mxu0 %v783_v11 }
 0xaa3   :  { %1575 = vmatprep.subr.bf16.mxu0 %v1708_v1 }
 0xaa7   :  { %1560 = vmatmul.mubr.msk.bf16.vlgmr.msra.gmra.mrb[20].mxu1 %vm65_vm1, %v723_v13 }
 0xaa8   :  { %1571 = vmatprep.mubr.msk.bf16.mxu1 %vm1709_vm0, %v1708_v1 }
 0xaa9   :  { %1566 = vmatmul.mubr.msk.bf16.vlgmr.msra.gmra.mrb[16].mxu0 %vm65_vm1, %v724_v14 }
 0xaaa   :  { %1577 = vmatprep.mubr.msk.bf16.mxu0 %vm1709_vm0, %v1708_v1 }
 0xb7a   :  { %v770_v15 = vpop.f32.mrb[20].mxu1 }
 0xb7b   :  { %v825_v16 = vmul.f32 0.17677669, %v770_v15  ;;  %v1561_v17 = vpop.f32.mrb[21].mxu1 }
 0xb7c   :  { %v773_v18 = vpop.f32.mrb[22].mxu1  ;;  %v819_v19 = vpop.f32.mrb[16].mxu0 }
 0xb7d   :  { %v826_v20 = vmul.f32 0.17677669, %v819_v19  ;;  %v1562_v21 = vpop.f32.mrb[23].mxu1  ;;  %v1567_v22 = vpop.f32.mrb[17].mxu0  ;;  %v827_v23 = vadd.f32 %v825_v16, %v1810_v32 }
 0xb7e   :  { %v822_v24 = vpop.f32.mrb[18].mxu0 }
 0xb7f   :  { %v1568_v25 = vpop.f32.mrb[19].mxu0  ;;  %v829_v26 = vsel %vm242_vm3, %v827_v23, -inf  ;;  %v828_v27 = vadd.f32 %v826_v20, %v1810_v32 }
 0xb80   :  { %830 = vmax.xlane.f32.xlu1 %v829_v26 }
 0xb81   :  { %v832_v30 = vsel %vm242_vm3, %v828_v27, -inf }
 0xb82   :  { %833 = vmax.xlane.f32.xlu0 %v832_v30 }
 0xb98   :  { %718 = vrot.lane.b32.xlu0 %v1421_v31, %s1713_s13 }
 0xc0d   :  { %v831_v33 = vpop.xlane.xlu1 %830 }
 0xc0e   :  { %v835_v34 = vsub.f32 %v827_v23, %v831_v33 }
 0xc0f   :  { %v834_v35 = vpop.xlane.xlu0 %833 }
 0xc10   :  { %v837_v36 = vmul.f32 1.442695, %v835_v34  ;;  %v836_v37 = vsub.f32 %v828_v27, %v834_v35 }
 0xc12   :  { %1660 = vpow2.f32 %v837_v36  ;;  %v839_v38 = vmul.f32 1.442695, %v836_v37 }
 0xc13   :  { %v719_v39 = vpop.permute.xlu0 %718 }
 0xc14   :  { %1662 = vpow2.f32 %v839_v38  ;;  %v722_v32 = vadd.f32 %v719_v39, %v693_v62  ;;  %v721_v44 = vadd.f32 %v719_v39, %v1912_v59  ;;  %v1638_v59 = vld [vmem:[%s2068_s4 + $0x30] sm:$0xff]  }
 0xc16   :  { %v854_v40 = vpack.c.bf16 %v722_v32, %v722_v32  ;;  %v853_v7 = vpack.c.bf16 %v721_v44, %v721_v44 }
 0xc18   :  { %905 = vrot.lane.b32.xlu0 %v854_v40, %s1713_s13  ;;  %v1430_v40 = vld [vmem:[%s2069_s5 + $0x10] ss:$0 sm:$0xff] }
 0xc1c   :  { %v1661_v41 = vpop.eup %1660 }
 0xc1d   :  { %v841_v42 = vsel %vm242_vm3, %v1661_v41, 0.0 }
 0xc1e   :  { %v1663_v6 = vpop.eup %1662  ;;  %842 = vadd.xlane.f32.xlu1 %v841_v42 }
 0xc1f   :  { %v844_v43 = vsel %vm242_vm3, %v1663_v6, 0.0 }
 0xc22   :  { %845 = vadd.xlane.f32.xlu1 %v844_v43  ;;  %v1431_v43 = vld [vmem:[%s2069_s5 + $0x11] ss:$0 sm:$0xff] }
 0xc33   :  { %856 = vrot.lane.b32.xlu1 %v853_v7, %s1713_s13 }
 0xc8a   :  { %v906_v45 = vpop.permute.xlu0 %905 }
 0xc8b   :  { %v911_v46 = vsel %vm275_vm4, %v906_v45, 0 }
 0xc8c   :  { %1576 = vmatpush3.bf16.msra.mxu0 %v911_v46 }
 0xc8d   :  { %1589 = vmatprep.subr.bf16.mxu0 %v1708_v1 }
 0xcab   :  { %v843_v47 = vpop.xlane.xlu1 %842 }
 0xcac   :  { %1664 = vrcp.f32 %v843_v47 }
 0xcaf   :  { %v846_v48 = vpop.xlane.xlu1 %845 }
 0xcb0   :  { %1666 = vrcp.f32 %v846_v48 }
 0xcb3   :  { %v857_v49 = vpop.permute.xlu1 %856 }
 0xcb4   :  { %v862_v50 = vsel %vm275_vm4, %v857_v49, 0  ;;  %v1432_v49 = vld [vmem:[%s2069_s5 + $0xe] ss:$0 sm:$0xff] }
 0xcb5   :  { %1570 = vmatpush3.bf16.msra.mxu1 %v862_v50 }
 0xcb6   :  { %v1665_v51 = vpop.eup %1664  ;;  %1581 = vmatprep.subr.bf16.mxu1 %v1708_v1 }
 0xcb7   :  { %v849_v52 = vmul.f32 %v1665_v51, %v1661_v41 }
 0xcb9   :  { %v851_v53 = vpack.c.bf16 %v849_v52, %v849_v52 }
 0xcba   :  { %v1667_v54 = vpop.eup %1666 }
 0xcbb   :  { %v850_v57 = vmul.f32 %v1667_v54, %v1663_v6  ;;  %1572 = vmatmul.mubr.msk.bf16.vlgmr.msra.gmra.mrb[24].mxu1 %vm242_vm3, %v851_v53 }
 0xcbc   :  { %1585 = vmatprep.mubr.msk.bf16.mxu1 %vm1709_vm0, %v1708_v1  ;;  %1582 = vmatpush3.bf16.msra.mxu1 %v1638_v59 }
 0xcbd   :  { %v852_v58 = vpack.c.bf16 %v850_v57, %v850_v57  ;;  %1583 = vmatprep.subr.bf16.mxu1 %v1708_v1 }
 0xcbf   :  { %1578 = vmatmul.mubr.msk.bf16.vlgmr.msra.gmra.mrb[20].mxu0 %vm242_vm3, %v852_v58 }
 0xcc0   :  { %1593 = vmatprep.mubr.msk.bf16.mxu0 %vm1709_vm0, %v1708_v1  ;;  %1584 = vmatpush3.bf16.msra.mxu1 %v1639_v60 }
 0xcc1   :  { %1597 = vmatprep.subr.bf16.mxu1 %v1708_v1 }
 0xd8e   :  { %v898_v61 = vpop.f32.mrb[24].mxu1 }
 0xd8f   :  { %v1573_v62 = vpop.f32.mrb[25].mxu1 }
 0xd90   :  { %v901_v63 = vpop.f32.mrb[26].mxu1 }
 0xd91   :  { %v1574_v0 = vpop.f32.mrb[27].mxu1 }
 0xd92   :  { %v947_v2 = vpop.f32.mrb[20].mxu0 }
 0xd93   :  { %v953_v3 = vpack.c.bf16 %v947_v2, %v898_v61  ;;  %v1579_v4 = vpop.f32.mrb[21].mxu0  ;;  %v1434_v61 = vld [vmem:[%s2069_s5 + $0xf] ss:$0 sm:$0xff] }
 0xd94   :  { %v950_v5 = vpop.f32.mrb[22].mxu0 }
 0xd95   :  { %v1580_v8 = vpop.f32.mrb[23].mxu0  ;;  %1586 = vmatmul.mubr.msk.bf16.vlgmr.msra.gmra.mrb[28].mxu1 %vm65_vm1, %v953_v3 }
 0xd96   :  { %1601 = vmatprep.mubr.msk.bf16.mxu1 %vm1709_vm0, %v1708_v1 }
 0xe68   :  { %v1007_v10 = vpop.f32.mrb[28].mxu1 }
 0xe69   :  { %v1008_v11 = vadd.f32 %v1426_v9, %v1007_v10  ;;  %v1587_v12 = vpop.f32.mrb[29].mxu1 }
 0xe6a   :  { %v1010_v13 = vpop.f32.mrb[30].mxu1  ;;  %v1714_v12 = vmov 1966171168  }
 0xe6b   :  { %v1011_v14 = vadd.f32 %v1426_v9, %v1010_v13  ;;  %v1588_v15 = vpop.f32.mrb[31].mxu1  ;;  %v1014_v16 = vadd.f32 %v1008_v11, %v1903_v55  ;;  %v1438_v11 = vld.sshfl [vmem:[%s2066_s2] sm:$0x11 pattern:$0x75316420]  ;;  %v1228_v13 = vunpack.c.l.s4 %v1714_v12 }
 0xe6c   :  { %v1226_v15 = vcombine.high %v1438_v11, %v1438_v11 }
 0xe6d   :  { %v1016_v17 = vsel %vm65_vm1, %v1014_v16, 0.0  ;;  %v1015_v18 = vadd.f32 %v1011_v14, %v1905_v56  ;;  %v2003_v14 = vshrl.u32 %v25_v28, 7 }
 0xe6e   :  { %1017 = vadd.xlane.f32.xlu0 %v1016_v17 }
 0xe6f   :  { %v1019_v19 = vsel %vm65_vm1, %v1015_v18, 0.0 }
 0xe70   :  { %1020 = vadd.xlane.f32.xlu1 %v1019_v19 }
 0xe81   :  { %1059 = vrot.lane.b32.xlu1 %v1638_v59, %s1711_s0 }
 0xe85   :  { %1116 = vrot.lane.b32.xlu1 %v1638_v59, %s1713_s13 }
 0xe89   :  { %1118 = vrot.lane.b32.xlu1 %v1639_v60, %s1713_s13 }
 0xefb   :  { %v1018_v20 = vpop.xlane.xlu0 %1017 }
 0xefc   :  { %v1022_v21 = vmul.f32 0.03125, %v1018_v20 }
 0xefd   :  { %v1021_v22 = vpop.xlane.xlu1 %1020 }
 0xefe   :  { %v1024_v23 = vsub.f32 %v1014_v16, %v1022_v21  ;;  %v1023_v24 = vmul.f32 0.03125, %v1021_v22  ;;  %v1229_v16 = vunpack.c.0.s8 %v1228_v13 }
 0xf00   :  { %v1025_v55 = vsub.f32 %v1015_v18, %v1023_v24  ;;  %v1026_v25 = vmul.f32 %v1024_v23, %v1024_v23  ;;  %v1232_v17 = vsub.s32 %v1229_v16, %v2003_v14  ;;  %v1243_v18 = vsub.s32 0, %v2003_v14 }
 0xf01   :  { %v1060_v30 = vpop.permute.xlu1 %1059 }
 0xf02   :  { %v1028_v26 = vsel %vm65_vm1, %v1026_v25, 0.0  ;;  %v1027_v56 = vmul.f32 %v1025_v55, %v1025_v55  ;;  %1590 = vmatpush3.bf16.msra.mxu0 %v1060_v30  ;;  %v1233_v19 = vrot.slane %v1438_v11, %v1232_v17  ;;  %v1240_v20 = vrot.slane %v1226_v15, %v1232_v17 }
 0xf03   :  { %1029 = vadd.xlane.f32.xlu0 %v1028_v26  ;;  %1591 = vmatprep.subr.bf16.mxu0 %v1708_v1 }
 0xf04   :  { %v1031_v27 = vsel %vm65_vm1, %v1027_v56, 0.0  ;;  %v1244_v21 = vrot.slane %v1233_v19, %v1243_v18  ;;  %v1248_v22 = vrot.slane %v1240_v20, %v1243_v18 }
 0xf05   :  { %v1117_v47 = vpop.permute.xlu1 %1116 }
 0xf06   :  { %1598 = vmatpush3.bf16.msra.mxu1 %v1117_v47 }
 0xf07   :  { %1032 = vadd.xlane.f32.xlu0 %v1031_v27  ;;  %1599 = vmatprep.subr.bf16.mxu1 %v1708_v1 }
 0xf09   :  { %v1119_v48 = vpop.permute.xlu1 %1118 }
 0xf0a   :  { %1600 = vmatpush3.bf16.msra.mxu1 %v1119_v48 }
 0xf1d   :  { %1061 = vrot.lane.b32.xlu0 %v1639_v60, %s1711_s0 }
 0xf90   :  { %v1030_v31 = vpop.xlane.xlu0 %1029 }
 0xf91   :  { %v1034_v33 = vmul.f32 0.03125, %v1030_v31 }
 0xf93   :  { %v1036_v34 = vadd.f32 1e-05, %v1034_v33 }
 0xf94   :  { %v1033_v35 = vpop.xlane.xlu0 %1032 }
 0xf95   :  { %1668 = vrsqrt.f32 %v1036_v34  ;;  %v1035_v36 = vmul.f32 0.03125, %v1033_v35  ;;  %v1640_v34 = vld [vmem:[%s2068_s4 + $0x40] sm:$0xff]   ;;  %v1641_v35 = vld [vmem:[%s2068_s4 + $0x48] sm:$0xff]  }
 0xf97   :  { %v1037_v37 = vadd.f32 1e-05, %v1035_v36  ;;  %v1642_v36 = vld [vmem:[%s2068_s4 + $0x50] sm:$0xff]  }
 0xf98   :  { %v1062_v38 = vpop.permute.xlu0 %1061 }
 0xf99   :  { %1670 = vrsqrt.f32 %v1037_v37  ;;  %1592 = vmatpush3.bf16.msra.mxu0 %v1062_v38  ;;  %v1643_v37 = vld [vmem:[%s2068_s4 + $0x58] sm:$0xff]  }
 0xf9a   :  { %1605 = vmatprep.subr.bf16.mxu0 %v1708_v1 }
 0xf9f   :  { %v1669_v39 = vpop.eup %1668 }
 0xfa0   :  { %v1040_v32 = vmul.f32 %v1669_v39, %v1024_v23  ;;  %v1627_v23 = vpack.i.bf16 %v1248_v22, %v1244_v21 }
 0xfa2   :  { %v1046_v42 = vmul.f32 %v1430_v40, %v1040_v32 }
 0xfa3   :  { %v1671_v41 = vpop.eup %1670 }
 0xfa4   :  { %v1041_v6 = vmul.f32 %v1671_v41, %v1025_v55  ;;  %v1052_v7 = vadd.f32 %v1431_v43, %v1046_v42 }
 0xfa6   :  { %v1047_v44 = vmul.f32 %v1430_v40, %v1041_v6 }
 0xfa8   :  { %v1053_v45 = vadd.f32 %v1431_v43, %v1047_v44  ;;  %v1436_v43 = vld [vmem:[%s2069_s5 + $0x12] ss:$0 sm:$0xff] }
 0xfaa   :  { %v1054_v46 = vpack.c.bf16 %v1053_v45, %v1052_v7 }
 0xfac   :  { %1594 = vmatmul.mubr.msk.bf16.vlgmr.msra.gmra.mrb[24].mxu0 %vm65_vm1, %v1054_v46 }
 0xfad   :  { %1613 = vmatprep.mubr.msk.bf16.mxu0 %vm1709_vm0, %v1708_v1  ;;  %1606 = vmatpush3.bf16.msra.mxu0 %v1640_v34 }
 0xfae   :  { %1607 = vmatprep.subr.bf16.mxu0 %v1708_v1 }
 0xfb1   :  { %1608 = vmatpush3.bf16.msra.mxu0 %v1641_v35 }
 0xfb2   :  { %1609 = vmatprep.subr.bf16.mxu0 %v1708_v1 }
 0xfb5   :  { %1610 = vmatpush3.bf16.msra.mxu0 %v1642_v36 }
 0xfb6   :  { %1611 = vmatprep.subr.bf16.mxu0 %v1708_v1 }
 0xfb9   :  { %1612 = vmatpush3.bf16.msra.mxu0 %v1643_v37 }
0x107f   :  { %v1102_v50 = vpop.f32.mrb[24].mxu0 }
0x1080   :  { %v1103_v51 = vadd.f32 %v1432_v49, %v1102_v50  ;;  %v1595_v52 = vpop.f32.mrb[25].mxu0 }
0x1081   :  { %v1105_v53 = vpop.f32.mrb[26].mxu0 }
0x1082   :  { %v1106_v54 = vadd.f32 %v1432_v49, %v1105_v53  ;;  %v1596_v57 = vpop.f32.mrb[27].mxu0  ;;  %v1109_v58 = vmax.f32 %v1103_v51, 0.0 }
0x1084   :  { %v1110_v59 = vmax.f32 %v1106_v54, 0.0 }
0x1086   :  { %v1111_v60 = vpack.c.bf16 %v1110_v59, %v1109_v58  ;;  %v1216_v58 = vld [vmem:[%s2069_s5 + $0x16] sm:$0x1]  ;;  %v1439_v59 = vld [vmem:[%s2069_s5 + $0x14] ss:$0 sm:$0xff] }
0x1087   :  { %1617 = vpush %v1216_v58 }
0x1088   :  { %1602 = vmatmul.mubr.msk.bf16.vlgmr.msra.gmra.mrb[32].mxu1 %vm65_vm1, %v1111_v60 }
0x10b8   :  { %s1618_s27 = spop %1617 }
0x10b9   :  { %v1349_v15 = vstv %s1618_s27 }
0x115b   :  { %v1159_v62 = vpop.f32.mrb[32].mxu1 }
0x115c   :  { %v1160_v63 = vadd.f32 %v1434_v61, %v1159_v62  ;;  %v1603_v0 = vpop.f32.mrb[33].mxu1 }
0x115d   :  { %v1162_v2 = vpop.f32.mrb[34].mxu1 }
0x115e   :  { %v1163_v3 = vadd.f32 %v1434_v61, %v1162_v2  ;;  %v1604_v4 = vpop.f32.mrb[35].mxu1  ;;  %v1166_v5 = vadd.f32 %v1160_v63, %v1052_v7  ;;  %v1331_v61 = vld [vmem:[%s2065_s1] sm:$0xff]  ;;  %v1332_v2 = vld [vmem:[%s2065_s1 + $0x8] sm:$0xff]  ;;  %s1715_s1 = smov [#allocation2]  }
0x1160   :  { %v1168_v8 = vsel %vm65_vm1, %v1166_v5, 0.0  ;;  %v1167_v9 = vadd.f32 %v1163_v3, %v1053_v45  ;;  %v1437_v45 = vld [vmem:[%s2069_s5 + $0x13] ss:$0 sm:$0xff]  ;;  %v1445_v3 = vld [vmem:[%s2069_s5 + $0x15] ss:$0 sm:$0xff]  ;;  %s1386_s5 = sshll.u32 %s1715_s1, 4  ;;  %s1387_s5 = int_to_ptr.vmem [resolvable:$true] %s1386_s5 }
0x1161   :  { %1169 = vadd.xlane.f32.xlu0 %v1168_v8  ;;  %s1684_s28 = scalar_lea.vmem %s1387_s5, 32  ;;  %p1689_p1 = scmp.lt.s32.totalorder %s1387_s5, %s1387_s5 }
0x1162   :  { %v1171_v10 = vsel %vm65_vm1, %v1167_v9, 0.0  ;;  %p1685_p0 = scmp.ne.s32.totalorder %s1387_s5, %s1684_s28  ;;  %p1690_p2 = scmp.lt.s32.totalorder %s1684_s28, %s1684_s28 }
0x1163   :  { %1172 = vadd.xlane.f32.xlu1 %v1171_v10 }
0x1164   :  { %p1691_p3 = por %p1690_p2, %p1689_p1 }
0x1166   :  { %p1692_p4 = pnand %p1691_p3, %p1685_p0 }
0x1174   :  { %1628 = vrot.lane.b32.xlu1 %v1627_v23, %s1710_s9 }
0x11ee   :  { %v1170_v24 = vpop.xlane.xlu0 %1169 }
0x11ef   :  { %v1174_v55 = vmul.f32 0.03125, %v1170_v24 }
0x11f0   :  { %v1173_v25 = vpop.xlane.xlu1 %1172 }
0x11f1   :  { %v1176_v26 = vsub.f32 %v1166_v5, %v1174_v55  ;;  %v1175_v56 = vmul.f32 0.03125, %v1173_v25  ;;  %v1369_v25 = vsub.s32 %v1807_v29, %v2003_v14 }
0x11f3   :  { %v1177_v28 = vsub.f32 %v1167_v9, %v1175_v56  ;;  %v1178_v27 = vmul.f32 %v1176_v26, %v1176_v26 }
0x11f4   :  { %v1629_v46 = vpop.permute.xlu1 %1628 }
0x11f5   :  { %v1180_v30 = vsel %vm65_vm1, %v1178_v27, 0.0  ;;  %v1179_v31 = vmul.f32 %v1177_v28, %v1177_v28  ;;  %v1631_v50 = vunpack.i.h.bf16 %v1629_v46  ;;  %v1630_v51 = vunpack.i.l.bf16 %v1629_v46 }
0x11f6   :  { %1181 = vadd.xlane.f32.xlu0 %v1180_v30 }
0x11f7   :  { %v1183_v33 = vsel %vm65_vm1, %v1179_v31, 0.0 }
0x11fa   :  { %1184 = vadd.xlane.f32.xlu0 %v1183_v33 }
0x1283   :  { %v1182_v38 = vpop.xlane.xlu0 %1181 }
0x1284   :  { %v1186_v39 = vmul.f32 0.03125, %v1182_v38 }
0x1286   :  { %v1188_v32 = vadd.f32 1e-05, %v1186_v39 }
0x1287   :  { %v1185_v40 = vpop.xlane.xlu0 %1184 }
0x1288   :  { %1672 = vrsqrt.f32 %v1188_v32  ;;  %v1187_v41 = vmul.f32 0.03125, %v1185_v40 }
0x128a   :  { %v1189_v42 = vadd.f32 1e-05, %v1187_v41 }
0x128c   :  { %1674 = vrsqrt.f32 %v1189_v42 }
0x1292   :  { %v1673_v6 = vpop.eup %1672 }
0x1293   :  { %v1192_v44 = vmul.f32 %v1673_v6, %v1176_v26 }
0x1295   :  { %v1198_v1 = vmul.f32 %v1436_v43, %v1192_v44 }
0x1296   :  { %v1675_v7 = vpop.eup %1674 }
0x1297   :  { %v1193_v47 = vmul.f32 %v1675_v7, %v1177_v28  ;;  %v1204_v49 = vadd.f32 %v1437_v45, %v1198_v1 }
0x1299   :  { %v1199_v48 = vmul.f32 %v1436_v43, %v1193_v47  ;;  %v1255_v54 = vsel %vm65_vm1, %v1204_v49, %v1630_v51 }
0x129b   :  { %v1205_v52 = vadd.f32 %v1437_v45, %v1199_v48 }
0x129d   :  { %v1256_v53 = vsel %vm65_vm1, %v1205_v52, %v1631_v50 }
0x129e   :  { %v1257_v57 = vpack.c.bf16 %v1256_v53, %v1255_v54 }
0x12a0   :  { %1614 = vmatmul.mubr.msk.bf16.vlgmr.msra.gmra.mrb[28].mxu0 %vm1286_vm5, %v1257_v57 }
0x1373   :  { %v1324_v60 = vpop.f32.mrb[28].mxu0 }
0x1374   :  { %v1325_v62 = vadd.f32 %v1439_v59, %v1324_v60  ;;  %v1615_v63 = vpop.f32.mrb[29].mxu0 }
0x1375   :  { %v1327_v0 = vpop.f32.mrb[30].mxu0 }
0x1376   :  { %v1333_v4 = vmul.f32 %v1331_v61, %v1325_v62  ;;  %v1328_v5 = vadd.f32 %v1439_v59, %v1327_v0  ;;  %v1616_v8 = vpop.f32.mrb[31].mxu0 }
0x1378   :  { %v1334_v9 = vmul.f32 %v1332_v2, %v1328_v5  ;;  %v1339_v10 = vmul.f32 %v1445_v3, %v1333_v4 }
0x137a   :  { %v1341_v11 = vsel %vm65_vm1, %v1339_v10, 0.0  ;;  %v1340_v12 = vmul.f32 %v1445_v3, %v1334_v9 }
0x137b   :  { %1342 = vadd.xlane.f32.xlu0 %v1341_v11 }
0x137c   :  { %v1344_v13 = vsel %vm65_vm1, %v1340_v12, 0.0 }
0x137f   :  { %1345 = vadd.xlane.f32.xlu0 %v1344_v13 }
0x1408   :  { %v1343_v16 = vpop.xlane.xlu0 %1342 }
0x1409   :  { %v1351_v17 = vadd.f32 %v1349_v15, %v1343_v16 }
0x140b   :  { %v1446_v18 = vmul.f32 -1.442695, %v1351_v17 }
0x140c   :  { %v1346_v19 = vpop.xlane.xlu0 %1345 }
0x140d   :  { %1676 = vpow2.f32 %v1446_v18  ;;  %v1352_v20 = vadd.f32 %v1349_v15, %v1346_v19 }
0x140f   :  { %v1447_v21 = vmul.f32 -1.442695, %v1352_v20 }
0x1411   :  { %1678 = vpow2.f32 %v1447_v21 }
0x1417   :  { %v1677_v22 = vpop.eup %1676 }
0x1418   :  { %v1359_v23 = vadd.f32 1.0, %v1677_v22 }
0x141a   :  { %1680 = vrcp.f32 %v1359_v23 }
0x141b   :  { %v1679_v24 = vpop.eup %1678 }
0x141c   :  { %v1360_v55 = vadd.f32 1.0, %v1679_v24 }
0x141e   :  { %1682 = vrcp.f32 %v1360_v55 }
0x1424   :  { %v1681_v26 = vpop.eup %1680 }
0x1425   :  { %v1370_v28 = vrot.slane %v1681_v26, %v1369_v25 }
0x1428   :  { %v1683_v56 = vpop.eup %1682 }
0x1429   :  { %v1374_v27 = vrot.slane %v1683_v56, %v1369_v25 }
0x142b   :  { %v1376_v30 = vsel %vm1375_vm6, %v1374_v27, %v1370_v28 }
0x142c   :  { %1379 = vst.msk [vmem:[#allocation2] sm:$0x3] %vm1378_vm7, %v1376_v30 }
0x142d   :  { %1695 = shalt.err (!%p1692_p4)
}
0x142e   :  { %s1696_s7 = scalar_lea.hbm %s2070_s6, 32 }
0x142f   :  { %p1697_p5 = scmp.ne.s32.totalorder %s2070_s6, %s1696_s7  ;;  %p1700_p6 = scmp.lt.u32.totalorder %s1696_s7, %s2070_s6 }
0x1431   :  { %p1702_p7 = pnand %p1700_p6, %p1697_p5 }
0x1433   :  { %1705 = shalt.err (!%p1702_p7)
}
0x1434   :  { %1389 = dma.vmem_to_hbm [thread:$0]  %s1387_s5, 32, %s2070_s6, [#allocation3]  }
0x1435   :  { %1706 = dma.done.wait [#allocation3], 32  }
0x1436   :  { %1707 = vsyncadd [#allocation3], 4294967264 }
0x1437   :  { %1393 = vsyncpa [#allocation3], 1 }

</bundles_post_ra>
